<compile_context>
chip_gen: v7x
topology: tpu7x:2x2x1
jax: 0.10.0
libtpu: 0.0.40
codegen_flags: <defaults>
</compile_context>

<pallas_src>
import math

import jax
import jax.numpy as jnp
from jax.experimental import pallas as pl
from jax.experimental.pallas import tpu as pltpu

# -------------------- configuration (small shapes) --------------------
BATCH = 2
INPUT_DIM = 24            # 24 -> 12 -> 6 -> 3 (odd) => n = 3 halvings
LATENT_DIM = 6
CATEGORICAL_DIM = 5
Z_CH = LATENT_DIM * CATEGORICAL_DIM   # 30 internal channels
KERNEL, STRIDE, PADDING = 4, 2, 1
FINAL_KERNEL = INPUT_DIM // (2 ** 3)  # = 3
TEMP = 0.5
EPS = 1e-20


def _r8(n):
    return ((n + 7) // 8) * 8


def _r16(n):
    return ((n + 15) // 16) * 16


# -------------------- static packed-slab layout (compile-time constants) --------------------
# Flattened (NLC, idx = l*C + c) activation widths through the 8 conv layers.
_LAYER_IO = [
    (INPUT_DIM * 1, 12 * Z_CH),   # enc0: Conv1d(1,30,4,2,1)        24  -> 360
    (12 * Z_CH,      6 * Z_CH),   # enc1: Conv1d(30,30,4,2,1)       360 -> 180
    ( 6 * Z_CH,      3 * Z_CH),   # enc2: Conv1d(30,30,4,2,1)       180 ->  90
    ( 3 * Z_CH,      1 * Z_CH),   # encz: Conv1d(30,30,3,1,0)        90 ->  30   (logits)
    ( 1 * Z_CH,      3 * Z_CH),   # dec0: ConvT1d(30,30,3,1,0)       30 ->  90
    ( 3 * Z_CH,      6 * Z_CH),   # dec1: ConvT1d(30,30,4,2,1)       90 -> 180
    ( 6 * Z_CH,     12 * Z_CH),   # dec2: ConvT1d(30,30,4,2,1)      180 -> 360
    (12 * Z_CH, INPUT_DIM * 1),   # decx: ConvT1d(30,1,4,2,1)       360 ->  24
]
N_LAYERS = len(_LAYER_IO)

_W_OFFS = []
_off = 0
for _r, _c in _LAYER_IO:
    _W_OFFS.append(_off)
    _off += _r16(_r)              # 16-aligned sublane offsets (bf16 packing)
W_ROWS = _r16(_off)               # = 1376
W_COLS = 384                      # >= max output width (360), multiple of 128

OUT_W = 128                       # single lane-dense packed output slab
QS_OFF = 64                       # softmax(q_y) lanes [64, 64+30)


# -------------------- the single fused Pallas kernel --------------------
def _fused_forward_kernel(x_ref, u_ref, w_ref, b_ref, out_ref):
    """Entire GumbelVAE forward for one batch tile.  All 8 conv layers are
    pre-lowered to block-Toeplitz matmuls packed in one bf16 slab (w_ref) plus
    one f32 bias slab (b_ref); the body is 8 MXU matmuls + grouped softmaxes."""

    def dense(h, li, relu=True):
        rows, cols = _LAYER_IO[li]
        off = _W_OFFS[li]
        w = w_ref[off:off + rows, 0:cols]                 # bf16 (rows, cols), static slice
        b = b_ref[li:li + 1, 0:cols]                      # f32 (1, cols)
        y = jnp.dot(h.astype(jnp.bfloat16), w,
                    preferred_element_type=jnp.float32) + b
        return jnp.maximum(y, 0.0) if relu else y

    def grouped_softmax(logits):                          # (TB, 30), groups of 5 lanes
        parts = []
        for g in range(LATENT_DIM):
            lo = g * CATEGORICAL_DIM
            blk = logits[:, lo:lo + CATEGORICAL_DIM]      # (TB, 5) static lane slice
            m = jnp.max(blk, axis=-1, keepdims=True)      # true per-group max (no underflow)
            e = jnp.exp(blk - m)
            s = jnp.sum(e, axis=-1, keepdims=True)
            parts.append(e * pl.reciprocal(s, approx=True))   # divide -> EUP slot
        return jnp.concatenate(parts, axis=-1)            # (TB, 30)

    # ---- encoder ----
    h = x_ref[...]                                        # (TB, 24) f32
    h = dense(h, 0)                                       # (TB, 360)
    h = dense(h, 1)                                       # (TB, 180)
    h = dense(h, 2)                                       # (TB,  90)
    q = dense(h, 3)                                       # (TB,  30) ReLU'd logits (ConvBlock)

    # ---- gumbel-softmax sample (hard=False) + softmax(q_y) ----
    gum = -jnp.log(-jnp.log(u_ref[...] + EPS) + EPS)      # gumbel(0,1) from uniform, f32
    z = grouped_softmax((q + gum) * (1.0 / TEMP))         # (TB, 30)
    qsoft = grouped_softmax(q)                            # (TB, 30)

    # ---- decoder ----
    d = dense(z, 4)                                       # (TB,  90)
    d = dense(d, 5)                                       # (TB, 180)
    d = dense(d, 6)                                       # (TB, 360)
    xhat = dense(d, 7, relu=False)                        # (TB,  24)

    # ---- single packed, lane-dense output block ----
    out_ref[...] = jnp.zeros_like(out_ref)
    out_ref[:, 0:INPUT_DIM] = xhat
    out_ref[:, QS_OFF:QS_OFF + Z_CH] = qsoft


# -------------------- one-time weight preprocessing (off the hot path) --------------------
def _conv_toeplitz(w, L_in, stride, padding):
    """PyTorch Conv1d weight (Cout, Cin, K) -> dense (L_in*Cin, L_out*Cout) matrix W such
    that out_flat = x_flat @ W, with NLC flattening index = l*C + c."""
    Cout, Cin, K = w.shape
    L_out = (L_in + 2 * padding - K) // stride + 1
    i = jnp.arange(L_in)[:, None]                  # input position
    t = jnp.arange(L_out)[None, :]                 # output position
    k = i - t * stride + padding                   # tap index, (L_in, L_out)
    valid = (k >= 0) & (k < K)
    w_kic = jnp.transpose(w, (2, 1, 0))            # (K, Cin, Cout)
    blocks = w_kic[jnp.clip(k, 0, K - 1)] * valid[..., None, None].astype(w.dtype)
    W = jnp.transpose(blocks, (0, 2, 1, 3)).reshape(L_in * Cin, L_out * Cout)
    return W, L_out


def _convT_toeplitz(w, L_in, stride, padding):
    """PyTorch ConvTranspose1d weight (Cin, Cout, K) -> dense (L_in*Cin, L_out*Cout) matrix."""
    Cin, Cout, K = w.shape
    L_out = (L_in - 1) * stride + K - 2 * padding
    t = jnp.arange(L_in)[:, None]                  # input position
    j = jnp.arange(L_out)[None, :]                 # output position
    k = j - t * stride + padding                   # tap index
    valid = (k >= 0) & (k < K)
    w_kic = jnp.transpose(w, (2, 0, 1))            # (K, Cin, Cout)
    blocks = w_kic[jnp.clip(k, 0, K - 1)] * valid[..., None, None].astype(w.dtype)
    W = jnp.transpose(blocks, (0, 2, 1, 3)).reshape(L_in * Cin, L_out * Cout)
    return W, L_out


def _tiled_bias(b, L_out):
    return jnp.tile(b, L_out).reshape(1, L_out * b.shape[0])


def prepare_packed_params(params):
    """Lower every conv / transposed-conv to its block-Toeplitz matmul and pack all
    layers into TWO slabs: a bf16 weight slab (W_ROWS, 384) and an f32 bias slab (8, 384).
    Pure parameter preprocessing -- run once, not per forward call."""
    mats, biases = [], []
    L = INPUT_DIM
    W, L = _conv_toeplitz(params['enc0_w'], L, STRIDE, PADDING); mats.append(W); biases.append(_tiled_bias(params['enc0_b'], L))
    W, L = _conv_toeplitz(params['enc1_w'], L, STRIDE, PADDING); mats.append(W); biases.append(_tiled_bias(params['enc1_b'], L))
    W, L = _conv_toeplitz(params['enc2_w'], L, STRIDE, PADDING); mats.append(W); biases.append(_tiled_bias(params['enc2_b'], L))
    W, L = _conv_toeplitz(params['encz_w'], L, 1, 0);            mats.append(W); biases.append(_tiled_bias(params['encz_b'], L))
    assert L == 1
    W, L = _convT_toeplitz(params['dec0_w'], L, 1, 0);            mats.append(W); biases.append(_tiled_bias(params['dec0_b'], L))
    W, L = _convT_toeplitz(params['dec1_w'], L, STRIDE, PADDING); mats.append(W); biases.append(_tiled_bias(params['dec1_b'], L))
    W, L = _convT_toeplitz(params['dec2_w'], L, STRIDE, PADDING); mats.append(W); biases.append(_tiled_bias(params['dec2_b'], L))
    W, L = _convT_toeplitz(params['decx_w'], L, STRIDE, PADDING); mats.append(W); biases.append(_tiled_bias(params['decx_b'], L))
    assert L == INPUT_DIM

    for W, (r, c) in zip(mats, _LAYER_IO):
        assert W.shape == (r, c), (W.shape, (r, c))

    wslab = jnp.zeros((W_ROWS, W_COLS), jnp.bfloat16)
    for W, off, (r, c) in zip(mats, _W_OFFS, _LAYER_IO):
        wslab = wslab.at[off:off + r, 0:c].set(W.astype(jnp.bfloat16))
    bslab = jnp.zeros((N_LAYERS, W_COLS), jnp.float32)
    for i, b in enumerate(biases):
        bslab = bslab.at[i, 0:b.shape[1]].set(b[0])
    return {'wslab': wslab, 'bslab': bslab}


# -------------------- deterministic parameter init (PyTorch-like) --------------------
def _uniform(key, shape, bound):
    return jax.random.uniform(key, shape, jnp.float32, -bound, bound)


def init_params(key):
    keys = jax.random.split(key, 16)
    p = {}

    def conv_p(kw, kb, cout, cin, ksz):
        bound = 1.0 / math.sqrt(cin * ksz)
        return _uniform(kw, (cout, cin, ksz), bound), _uniform(kb, (cout,), bound)

    def tconv_p(kw, kb, cin, cout, ksz):
        bound = 1.0 / math.sqrt(cout * ksz)
        return _uniform(kw, (cin, cout, ksz), bound), _uniform(kb, (cout,), bound)

    p['enc0_w'], p['enc0_b'] = conv_p(keys[0], keys[1], Z_CH, 1, KERNEL)
    p['enc1_w'], p['enc1_b'] = conv_p(keys[2], keys[3], Z_CH, Z_CH, KERNEL)
    p['enc2_w'], p['enc2_b'] = conv_p(keys[4], keys[5], Z_CH, Z_CH, KERNEL)
    p['encz_w'], p['encz_b'] = conv_p(keys[6], keys[7], Z_CH, Z_CH, FINAL_KERNEL)
    p['dec0_w'], p['dec0_b'] = tconv_p(keys[8], keys[9], Z_CH, Z_CH, FINAL_KERNEL)
    p['dec1_w'], p['dec1_b'] = tconv_p(keys[10], keys[11], Z_CH, Z_CH, KERNEL)
    p['dec2_w'], p['dec2_b'] = tconv_p(keys[12], keys[13], Z_CH, Z_CH, KERNEL)
    p['decx_w'], p['decx_b'] = tconv_p(keys[14], keys[15], Z_CH, 1, KERNEL)
    return p


# -------------------- GumbelVAE forward: one batch-tiled pallas_call --------------------
@jax.jit
def gumbel_vae_forward(packed, x, gumbel_uniform):
    """x: (B, 1, INPUT_DIM) NCW (PyTorch convention). Returns (x_hat, softmax(q_y))."""
    B = x.shape[0]
    TB = min(128, _r8(B))                 # batch tile: MXU-native M cap (v5e), ~0.2 MB/step VMEM
    Bp = ((B + TB - 1) // TB) * TB
    x_flat = x.reshape(B, INPUT_DIM).astype(jnp.float32)
    u_flat = gumbel_uniform.reshape(B, Z_CH).astype(jnp.float32)
    if Bp != B:
        x_flat = jnp.pad(x_flat, ((0, Bp - B), (0, 0)))
        u_flat = jnp.pad(u_flat, ((0, Bp - B), (0, 0)), constant_values=0.5)

    out = pl.pallas_call(
        _fused_forward_kernel,
        out_shape=jax.ShapeDtypeStruct((Bp, OUT_W), jnp.float32),
        grid_spec=pltpu.PrefetchScalarGridSpec(
            num_scalar_prefetch=0,
            grid=(Bp // TB,),
            in_specs=[
                pl.BlockSpec((TB, INPUT_DIM), lambda i: (i, 0)),        # x tile
                pl.BlockSpec((TB, Z_CH), lambda i: (i, 0)),             # uniform noise tile
                pl.BlockSpec((W_ROWS, W_COLS), lambda i: (0, 0)),       # bf16 weight slab (resident)
                pl.BlockSpec((N_LAYERS, W_COLS), lambda i: (0, 0)),     # f32 bias slab (resident)
            ],
            out_specs=pl.BlockSpec((TB, OUT_W), lambda i: (i, 0)),      # packed lane-dense output
        ),
        compiler_params=pltpu.CompilerParams(
            dimension_semantics=("parallel",)),                         # v7x: shard batch over 2 TCs
    )(x_flat, u_flat, packed['wslab'], packed['bslab'])

    x_hat = out[:B, 0:INPUT_DIM].reshape(B, 1, INPUT_DIM)               # back to NCW
    q_soft = out[:B, QS_OFF:QS_OFF + Z_CH].reshape(B, 1, Z_CH)
    return x_hat, q_soft


# -------------------- plain-JAX reference (in-script numerical cross-check only) --------------------
@jax.jit
def _reference_forward(params, x, u):
    def conv1d(h, w, b, s, p, relu):                       # h: (B,L,Cin), w: (Cout,Cin,K)
        Cout, Cin, K = w.shape
        L_out = (h.shape[1] + 2 * p - K) // s + 1
        hp = jnp.pad(h, ((0, 0), (p, p), (0, 0)))
        cols = jnp.stack([hp[:, t * s:t * s + K, :] for t in range(L_out)], axis=1)
        out = jnp.einsum('btkc,ock->bto', cols, w) + b
        return jnp.maximum(out, 0.0) if relu else out

    def convT1d(h, w, b, s, p, relu):                      # w: (Cin,Cout,K)
        Cin, Cout, K = w.shape
        B_, L, _ = h.shape
        up = jnp.zeros((B_, (L - 1) * s + 1, Cin), h.dtype).at[:, ::s, :].set(h) if s > 1 else h
        weq = jnp.flip(jnp.transpose(w, (1, 0, 2)), axis=-1)
        return conv1d(up, weq, b, 1, K - 1 - p, relu)

    B = x.shape[0]
    h = jnp.transpose(x, (0, 2, 1))
    h = conv1d(h, params['enc0_w'], params['enc0_b'], STRIDE, PADDING, True)
    h = conv1d(h, params['enc1_w'], params['enc1_b'], STRIDE, PADDING, True)
    h = conv1d(h, params['enc2_w'], params['enc2_b'], STRIDE, PADDING, True)
    q = conv1d(h, params['encz_w'], params['encz_b'], 1, 0, True).reshape(B, LATENT_DIM, CATEGORICAL_DIM)
    g = -jnp.log(-jnp.log(u + EPS) + EPS)
    z = jax.nn.softmax((q + g) / TEMP, axis=-1).reshape(B, 1, Z_CH)
    d = convT1d(z, params['dec0_w'], params['dec0_b'], 1, 0, True)
    d = convT1d(d, params['dec1_w'], params['dec1_b'], STRIDE, PADDING, True)
    d = convT1d(d, params['dec2_w'], params['dec2_b'], STRIDE, PADDING, True)
    xh = convT1d(d, params['decx_w'], params['decx_b'], STRIDE, PADDING, False)
    return jnp.transpose(xh, (0, 2, 1)), jax.nn.softmax(q, axis=-1).reshape(B, 1, Z_CH)


# -------------------- main --------------------
if __name__ == "__main__":
    root = jax.random.PRNGKey(0)
    k_params, k_x, k_noise = jax.random.split(root, 3)

    params = init_params(k_params)
    packed = prepare_packed_params(params)                  # one-time, off the hot path

    # Small demo batch (per spec) + a larger batch exercising the multi-step parallel grid.
    for B in (BATCH, 256):
        kx = jax.random.fold_in(k_x, B)
        kn = jax.random.fold_in(k_noise, B)
        x = jax.random.normal(kx, (B, 1, INPUT_DIM), jnp.float32)          # NCW input
        gumbel_uniform = jax.random.uniform(kn, (B, LATENT_DIM, CATEGORICAL_DIM),
                                            jnp.float32, minval=1e-7, maxval=1.0 - 1e-7)

        x_hat, q_soft = gumbel_vae_forward(packed, x, gumbel_uniform)
        jax.block_until_ready((x_hat, q_soft))

        # shape / sanity checks
        assert x_hat.shape == (B, 1, INPUT_DIM), x_hat.shape
        assert q_soft.shape == (B, 1, Z_CH), q_soft.shape
        assert bool(jnp.all(jnp.isfinite(x_hat))) and bool(jnp.all(jnp.isfinite(q_soft)))
        group_sums = q_soft.reshape(B, LATENT_DIM, CATEGORICAL_DIM).sum(-1)
        assert bool(jnp.all(jnp.abs(group_sums - 1.0) < 1e-2)), "grouped softmax not normalized"

        # numerical cross-check vs a plain-JAX f32 implementation of the same forward
        x_ref_out, q_ref_out = _reference_forward(params, x, gumbel_uniform)
        assert float(jnp.max(jnp.abs(x_hat - x_ref_out))) < 1e-1
        assert float(jnp.max(jnp.abs(q_soft - q_ref_out))) < 5e-2

    print("KERNEL_OK")
</pallas_src>

<mosaic_0001>
module attributes {stable_mosaic.version = 11 : i64} {
  func.func @_fused_forward_kernel(%arg0: i32, %arg1: memref<8x24xf32, #tpu.memory_space<vmem>>, %arg2: memref<8x30xf32, #tpu.memory_space<vmem>>, %arg3: memref<1376x384xbf16, #tpu.memory_space<vmem>>, %arg4: memref<8x384xf32, #tpu.memory_space<vmem>>, %arg5: memref<8x128xf32, #tpu.memory_space<vmem>>) attributes {dimension_semantics = [#tpu.dimension_semantics<parallel>], iteration_bounds = array<i64: 1>, scalar_prefetch = 0 : i64, scratch_operands = 0 : i64, tpu.core_type = #tpu.core_type<tc>, window_params = [{transform_indices = @transform_0, window_bounds = array<i64: 8, 24>}, {transform_indices = @transform_1, window_bounds = array<i64: 8, 30>}, {pipeline_mode = #tpu.pipeline_mode<synchronous>, transform_indices = @transform_2, window_bounds = array<i64: 1376, 384>}, {pipeline_mode = #tpu.pipeline_mode<synchronous>, transform_indices = @transform_3, window_bounds = array<i64: 8, 384>}, {transform_indices = @transform_4, window_bounds = array<i64: 8, 128>}]} {
    %c0 = arith.constant 0 : index
    %c0_0 = arith.constant 0 : index
    %0 = vector.load %arg1[%c0, %c0_0] : memref<8x24xf32, #tpu.memory_space<vmem>>, vector<8x24xf32>
    %c0_1 = arith.constant 0 : index
    %c0_2 = arith.constant 0 : index
    %1 = vector.load %arg3[%c0_1, %c0_2] : memref<1376x384xbf16, #tpu.memory_space<vmem>>, vector<24x360xbf16>
    %c0_3 = arith.constant 0 : index
    %c0_4 = arith.constant 0 : index
    %2 = vector.load %arg4[%c0_3, %c0_4] : memref<8x384xf32, #tpu.memory_space<vmem>>, vector<1x360xf32>
    %3 = arith.truncf %0 : vector<8x24xf32> to vector<8x24xbf16>
    %cst = arith.constant dense<0.000000e+00> : vector<8x360xf32>
    %4 = tpu.matmul %3, %1, %cst {dimension_numbers = #tpu.dot_dimension_numbers<[1], [0], [0], [1], [0, 0, 1, 1], [], []>} : vector<8x24xbf16>, vector<24x360xbf16>, vector<8x360xf32> -> vector<8x360xf32>
    %5 = vector.broadcast %2 : vector<1x360xf32> to vector<8x360xf32>
    %6 = arith.addf %4, %5 : vector<8x360xf32>
    %cst_5 = arith.constant 0.000000e+00 : f32
    %7 = vector.broadcast %cst_5 : f32 to vector<8x360xf32>
    %8 = arith.maximumf %6, %7 : vector<8x360xf32>
    %c32 = arith.constant 32 : index
    %c0_6 = arith.constant 0 : index
    %9 = vector.load %arg3[%c32, %c0_6] : memref<1376x384xbf16, #tpu.memory_space<vmem>>, vector<360x180xbf16>
    %c1 = arith.constant 1 : index
    %c0_7 = arith.constant 0 : index
    %10 = vector.load %arg4[%c1, %c0_7] : memref<8x384xf32, #tpu.memory_space<vmem>>, vector<1x180xf32>
    %11 = arith.truncf %8 : vector<8x360xf32> to vector<8x360xbf16>
    %cst_8 = arith.constant dense<0.000000e+00> : vector<8x180xf32>
    %12 = tpu.matmul %11, %9, %cst_8 {dimension_numbers = #tpu.dot_dimension_numbers<[1], [0], [0], [1], [0, 0, 1, 1], [], []>} : vector<8x360xbf16>, vector<360x180xbf16>, vector<8x180xf32> -> vector<8x180xf32>
    %13 = vector.broadcast %10 : vector<1x180xf32> to vector<8x180xf32>
    %14 = arith.addf %12, %13 : vector<8x180xf32>
    %cst_9 = arith.constant 0.000000e+00 : f32
    %15 = vector.broadcast %cst_9 : f32 to vector<8x180xf32>
    %16 = arith.maximumf %14, %15 : vector<8x180xf32>
    %c400 = arith.constant 400 : index
    %c0_10 = arith.constant 0 : index
    %17 = vector.load %arg3[%c400, %c0_10] : memref<1376x384xbf16, #tpu.memory_space<vmem>>, vector<180x90xbf16>
    %c2 = arith.constant 2 : index
    %c0_11 = arith.constant 0 : index
    %18 = vector.load %arg4[%c2, %c0_11] : memref<8x384xf32, #tpu.memory_space<vmem>>, vector<1x90xf32>
    %19 = arith.truncf %16 : vector<8x180xf32> to vector<8x180xbf16>
    %cst_12 = arith.constant dense<0.000000e+00> : vector<8x90xf32>
    %20 = tpu.matmul %19, %17, %cst_12 {dimension_numbers = #tpu.dot_dimension_numbers<[1], [0], [0], [1], [0, 0, 1, 1], [], []>} : vector<8x180xbf16>, vector<180x90xbf16>, vector<8x90xf32> -> vector<8x90xf32>
    %21 = vector.broadcast %18 : vector<1x90xf32> to vector<8x90xf32>
    %22 = arith.addf %20, %21 : vector<8x90xf32>
    %cst_13 = arith.constant 0.000000e+00 : f32
    %23 = vector.broadcast %cst_13 : f32 to vector<8x90xf32>
    %24 = arith.maximumf %22, %23 : vector<8x90xf32>
    %c592 = arith.constant 592 : index
    %c0_14 = arith.constant 0 : index
    %25 = vector.load %arg3[%c592, %c0_14] : memref<1376x384xbf16, #tpu.memory_space<vmem>>, vector<90x30xbf16>
    %c3 = arith.constant 3 : index
    %c0_15 = arith.constant 0 : index
    %26 = vector.load %arg4[%c3, %c0_15] : memref<8x384xf32, #tpu.memory_space<vmem>>, vector<1x30xf32>
    %27 = arith.truncf %24 : vector<8x90xf32> to vector<8x90xbf16>
    %cst_16 = arith.constant dense<0.000000e+00> : vector<8x30xf32>
    %28 = tpu.matmul %27, %25, %cst_16 {dimension_numbers = #tpu.dot_dimension_numbers<[1], [0], [0], [1], [0, 0, 1, 1], [], []>} : vector<8x90xbf16>, vector<90x30xbf16>, vector<8x30xf32> -> vector<8x30xf32>
    %29 = vector.broadcast %26 : vector<1x30xf32> to vector<8x30xf32>
    %30 = arith.addf %28, %29 : vector<8x30xf32>
    %cst_17 = arith.constant 0.000000e+00 : f32
    %31 = vector.broadcast %cst_17 : f32 to vector<8x30xf32>
    %32 = arith.maximumf %30, %31 : vector<8x30xf32>
    %c0_18 = arith.constant 0 : index
    %c0_19 = arith.constant 0 : index
    %33 = vector.load %arg2[%c0_18, %c0_19] : memref<8x30xf32, #tpu.memory_space<vmem>>, vector<8x30xf32>
    %cst_20 = arith.constant 9.99999968E-21 : f32
    %34 = vector.broadcast %cst_20 : f32 to vector<8x30xf32>
    %35 = arith.addf %33, %34 : vector<8x30xf32>
    %36 = math.log %35 : vector<8x30xf32>
    %cst_21 = arith.constant 0.000000e+00 : f32
    %37 = vector.broadcast %cst_21 : f32 to vector<8x30xf32>
    %38 = arith.subf %37, %36 : vector<8x30xf32>
    %cst_22 = arith.constant 9.99999968E-21 : f32
    %39 = vector.broadcast %cst_22 : f32 to vector<8x30xf32>
    %40 = arith.addf %38, %39 : vector<8x30xf32>
    %41 = math.log %40 : vector<8x30xf32>
    %cst_23 = arith.constant 0.000000e+00 : f32
    %42 = vector.broadcast %cst_23 : f32 to vector<8x30xf32>
    %43 = arith.subf %42, %41 : vector<8x30xf32>
    %44 = arith.addf %32, %43 : vector<8x30xf32>
    %cst_24 = arith.constant 2.000000e+00 : f32
    %45 = vector.broadcast %cst_24 : f32 to vector<8x30xf32>
    %46 = arith.mulf %44, %45 : vector<8x30xf32>
    %47 = vector.extract_strided_slice %46 {offsets = [0, 0], sizes = [8, 5], strides = [1, 1]} : vector<8x30xf32> to vector<8x5xf32>
    %cst_25 = arith.constant dense<0xFF800000> : vector<8xf32>
    %48 = vector.multi_reduction <maximumf>, %47, %cst_25 [1] : vector<8x5xf32> to vector<8xf32>
    %49 = vector.shape_cast %48 : vector<8xf32> to vector<8x1xf32>
    %50 = vector.broadcast %49 : vector<8x1xf32> to vector<8x5xf32>
    %51 = arith.subf %47, %50 : vector<8x5xf32>
    %52 = math.exp %51 : vector<8x5xf32>
    %cst_26 = arith.constant dense<0.000000e+00> : vector<8xf32>
    %53 = vector.multi_reduction <add>, %52, %cst_26 [1] : vector<8x5xf32> to vector<8xf32>
    %54 = vector.shape_cast %53 : vector<8xf32> to vector<8x1xf32>
    %55 = tpu.reciprocal %54 {approx = true} : vector<8x1xf32> -> vector<8x1xf32>
    %56 = vector.broadcast %55 : vector<8x1xf32> to vector<8x5xf32>
    %57 = arith.mulf %52, %56 : vector<8x5xf32>
    %58 = vector.extract_strided_slice %46 {offsets = [0, 5], sizes = [8, 5], strides = [1, 1]} : vector<8x30xf32> to vector<8x5xf32>
    %cst_27 = arith.constant dense<0xFF800000> : vector<8xf32>
    %59 = vector.multi_reduction <maximumf>, %58, %cst_27 [1] : vector<8x5xf32> to vector<8xf32>
    %60 = vector.shape_cast %59 : vector<8xf32> to vector<8x1xf32>
    %61 = vector.broadcast %60 : vector<8x1xf32> to vector<8x5xf32>
    %62 = arith.subf %58, %61 : vector<8x5xf32>
    %63 = math.exp %62 : vector<8x5xf32>
    %cst_28 = arith.constant dense<0.000000e+00> : vector<8xf32>
    %64 = vector.multi_reduction <add>, %63, %cst_28 [1] : vector<8x5xf32> to vector<8xf32>
    %65 = vector.shape_cast %64 : vector<8xf32> to vector<8x1xf32>
    %66 = tpu.reciprocal %65 {approx = true} : vector<8x1xf32> -> vector<8x1xf32>
    %67 = vector.broadcast %66 : vector<8x1xf32> to vector<8x5xf32>
    %68 = arith.mulf %63, %67 : vector<8x5xf32>
    %69 = vector.extract_strided_slice %46 {offsets = [0, 10], sizes = [8, 5], strides = [1, 1]} : vector<8x30xf32> to vector<8x5xf32>
    %cst_29 = arith.constant dense<0xFF800000> : vector<8xf32>
    %70 = vector.multi_reduction <maximumf>, %69, %cst_29 [1] : vector<8x5xf32> to vector<8xf32>
    %71 = vector.shape_cast %70 : vector<8xf32> to vector<8x1xf32>
    %72 = vector.broadcast %71 : vector<8x1xf32> to vector<8x5xf32>
    %73 = arith.subf %69, %72 : vector<8x5xf32>
    %74 = math.exp %73 : vector<8x5xf32>
    %cst_30 = arith.constant dense<0.000000e+00> : vector<8xf32>
    %75 = vector.multi_reduction <add>, %74, %cst_30 [1] : vector<8x5xf32> to vector<8xf32>
    %76 = vector.shape_cast %75 : vector<8xf32> to vector<8x1xf32>
    %77 = tpu.reciprocal %76 {approx = true} : vector<8x1xf32> -> vector<8x1xf32>
    %78 = vector.broadcast %77 : vector<8x1xf32> to vector<8x5xf32>
    %79 = arith.mulf %74, %78 : vector<8x5xf32>
    %80 = vector.extract_strided_slice %46 {offsets = [0, 15], sizes = [8, 5], strides = [1, 1]} : vector<8x30xf32> to vector<8x5xf32>
    %cst_31 = arith.constant dense<0xFF800000> : vector<8xf32>
    %81 = vector.multi_reduction <maximumf>, %80, %cst_31 [1] : vector<8x5xf32> to vector<8xf32>
    %82 = vector.shape_cast %81 : vector<8xf32> to vector<8x1xf32>
    %83 = vector.broadcast %82 : vector<8x1xf32> to vector<8x5xf32>
    %84 = arith.subf %80, %83 : vector<8x5xf32>
    %85 = math.exp %84 : vector<8x5xf32>
    %cst_32 = arith.constant dense<0.000000e+00> : vector<8xf32>
    %86 = vector.multi_reduction <add>, %85, %cst_32 [1] : vector<8x5xf32> to vector<8xf32>
    %87 = vector.shape_cast %86 : vector<8xf32> to vector<8x1xf32>
    %88 = tpu.reciprocal %87 {approx = true} : vector<8x1xf32> -> vector<8x1xf32>
    %89 = vector.broadcast %88 : vector<8x1xf32> to vector<8x5xf32>
    %90 = arith.mulf %85, %89 : vector<8x5xf32>
    %91 = vector.extract_strided_slice %46 {offsets = [0, 20], sizes = [8, 5], strides = [1, 1]} : vector<8x30xf32> to vector<8x5xf32>
    %cst_33 = arith.constant dense<0xFF800000> : vector<8xf32>
    %92 = vector.multi_reduction <maximumf>, %91, %cst_33 [1] : vector<8x5xf32> to vector<8xf32>
    %93 = vector.shape_cast %92 : vector<8xf32> to vector<8x1xf32>
    %94 = vector.broadcast %93 : vector<8x1xf32> to vector<8x5xf32>
    %95 = arith.subf %91, %94 : vector<8x5xf32>
    %96 = math.exp %95 : vector<8x5xf32>
    %cst_34 = arith.constant dense<0.000000e+00> : vector<8xf32>
    %97 = vector.multi_reduction <add>, %96, %cst_34 [1] : vector<8x5xf32> to vector<8xf32>
    %98 = vector.shape_cast %97 : vector<8xf32> to vector<8x1xf32>
    %99 = tpu.reciprocal %98 {approx = true} : vector<8x1xf32> -> vector<8x1xf32>
    %100 = vector.broadcast %99 : vector<8x1xf32> to vector<8x5xf32>
    %101 = arith.mulf %96, %100 : vector<8x5xf32>
    %102 = vector.extract_strided_slice %46 {offsets = [0, 25], sizes = [8, 5], strides = [1, 1]} : vector<8x30xf32> to vector<8x5xf32>
    %cst_35 = arith.constant dense<0xFF800000> : vector<8xf32>
    %103 = vector.multi_reduction <maximumf>, %102, %cst_35 [1] : vector<8x5xf32> to vector<8xf32>
    %104 = vector.shape_cast %103 : vector<8xf32> to vector<8x1xf32>
    %105 = vector.broadcast %104 : vector<8x1xf32> to vector<8x5xf32>
    %106 = arith.subf %102, %105 : vector<8x5xf32>
    %107 = math.exp %106 : vector<8x5xf32>
    %cst_36 = arith.constant dense<0.000000e+00> : vector<8xf32>
    %108 = vector.multi_reduction <add>, %107, %cst_36 [1] : vector<8x5xf32> to vector<8xf32>
    %109 = vector.shape_cast %108 : vector<8xf32> to vector<8x1xf32>
    %110 = tpu.reciprocal %109 {approx = true} : vector<8x1xf32> -> vector<8x1xf32>
    %111 = vector.broadcast %110 : vector<8x1xf32> to vector<8x5xf32>
    %112 = arith.mulf %107, %111 : vector<8x5xf32>
    %113 = tpu.concatenate %57, %68, %79, %90, %101, %112 in 1 : vector<8x5xf32>, vector<8x5xf32>, vector<8x5xf32>, vector<8x5xf32>, vector<8x5xf32>, vector<8x5xf32> -> vector<8x30xf32>
    %114 = vector.extract_strided_slice %32 {offsets = [0, 0], sizes = [8, 5], strides = [1, 1]} : vector<8x30xf32> to vector<8x5xf32>
    %cst_37 = arith.constant dense<0xFF800000> : vector<8xf32>
    %115 = vector.multi_reduction <maximumf>, %114, %cst_37 [1] : vector<8x5xf32> to vector<8xf32>
    %116 = vector.shape_cast %115 : vector<8xf32> to vector<8x1xf32>
    %117 = vector.broadcast %116 : vector<8x1xf32> to vector<8x5xf32>
    %118 = arith.subf %114, %117 : vector<8x5xf32>
    %119 = math.exp %118 : vector<8x5xf32>
    %cst_38 = arith.constant dense<0.000000e+00> : vector<8xf32>
    %120 = vector.multi_reduction <add>, %119, %cst_38 [1] : vector<8x5xf32> to vector<8xf32>
    %121 = vector.shape_cast %120 : vector<8xf32> to vector<8x1xf32>
    %122 = tpu.reciprocal %121 {approx = true} : vector<8x1xf32> -> vector<8x1xf32>
    %123 = vector.broadcast %122 : vector<8x1xf32> to vector<8x5xf32>
    %124 = arith.mulf %119, %123 : vector<8x5xf32>
    %125 = vector.extract_strided_slice %32 {offsets = [0, 5], sizes = [8, 5], strides = [1, 1]} : vector<8x30xf32> to vector<8x5xf32>
    %cst_39 = arith.constant dense<0xFF800000> : vector<8xf32>
    %126 = vector.multi_reduction <maximumf>, %125, %cst_39 [1] : vector<8x5xf32> to vector<8xf32>
    %127 = vector.shape_cast %126 : vector<8xf32> to vector<8x1xf32>
    %128 = vector.broadcast %127 : vector<8x1xf32> to vector<8x5xf32>
    %129 = arith.subf %125, %128 : vector<8x5xf32>
    %130 = math.exp %129 : vector<8x5xf32>
    %cst_40 = arith.constant dense<0.000000e+00> : vector<8xf32>
    %131 = vector.multi_reduction <add>, %130, %cst_40 [1] : vector<8x5xf32> to vector<8xf32>
    %132 = vector.shape_cast %131 : vector<8xf32> to vector<8x1xf32>
    %133 = tpu.reciprocal %132 {approx = true} : vector<8x1xf32> -> vector<8x1xf32>
    %134 = vector.broadcast %133 : vector<8x1xf32> to vector<8x5xf32>
    %135 = arith.mulf %130, %134 : vector<8x5xf32>
    %136 = vector.extract_strided_slice %32 {offsets = [0, 10], sizes = [8, 5], strides = [1, 1]} : vector<8x30xf32> to vector<8x5xf32>
    %cst_41 = arith.constant dense<0xFF800000> : vector<8xf32>
    %137 = vector.multi_reduction <maximumf>, %136, %cst_41 [1] : vector<8x5xf32> to vector<8xf32>
    %138 = vector.shape_cast %137 : vector<8xf32> to vector<8x1xf32>
    %139 = vector.broadcast %138 : vector<8x1xf32> to vector<8x5xf32>
    %140 = arith.subf %136, %139 : vector<8x5xf32>
    %141 = math.exp %140 : vector<8x5xf32>
    %cst_42 = arith.constant dense<0.000000e+00> : vector<8xf32>
    %142 = vector.multi_reduction <add>, %141, %cst_42 [1] : vector<8x5xf32> to vector<8xf32>
    %143 = vector.shape_cast %142 : vector<8xf32> to vector<8x1xf32>
    %144 = tpu.reciprocal %143 {approx = true} : vector<8x1xf32> -> vector<8x1xf32>
    %145 = vector.broadcast %144 : vector<8x1xf32> to vector<8x5xf32>
    %146 = arith.mulf %141, %145 : vector<8x5xf32>
    %147 = vector.extract_strided_slice %32 {offsets = [0, 15], sizes = [8, 5], strides = [1, 1]} : vector<8x30xf32> to vector<8x5xf32>
    %cst_43 = arith.constant dense<0xFF800000> : vector<8xf32>
    %148 = vector.multi_reduction <maximumf>, %147, %cst_43 [1] : vector<8x5xf32> to vector<8xf32>
    %149 = vector.shape_cast %148 : vector<8xf32> to vector<8x1xf32>
    %150 = vector.broadcast %149 : vector<8x1xf32> to vector<8x5xf32>
    %151 = arith.subf %147, %150 : vector<8x5xf32>
    %152 = math.exp %151 : vector<8x5xf32>
    %cst_44 = arith.constant dense<0.000000e+00> : vector<8xf32>
    %153 = vector.multi_reduction <add>, %152, %cst_44 [1] : vector<8x5xf32> to vector<8xf32>
    %154 = vector.shape_cast %153 : vector<8xf32> to vector<8x1xf32>
    %155 = tpu.reciprocal %154 {approx = true} : vector<8x1xf32> -> vector<8x1xf32>
    %156 = vector.broadcast %155 : vector<8x1xf32> to vector<8x5xf32>
    %157 = arith.mulf %152, %156 : vector<8x5xf32>
    %158 = vector.extract_strided_slice %32 {offsets = [0, 20], sizes = [8, 5], strides = [1, 1]} : vector<8x30xf32> to vector<8x5xf32>
    %cst_45 = arith.constant dense<0xFF800000> : vector<8xf32>
    %159 = vector.multi_reduction <maximumf>, %158, %cst_45 [1] : vector<8x5xf32> to vector<8xf32>
    %160 = vector.shape_cast %159 : vector<8xf32> to vector<8x1xf32>
    %161 = vector.broadcast %160 : vector<8x1xf32> to vector<8x5xf32>
    %162 = arith.subf %158, %161 : vector<8x5xf32>
    %163 = math.exp %162 : vector<8x5xf32>
    %cst_46 = arith.constant dense<0.000000e+00> : vector<8xf32>
    %164 = vector.multi_reduction <add>, %163, %cst_46 [1] : vector<8x5xf32> to vector<8xf32>
    %165 = vector.shape_cast %164 : vector<8xf32> to vector<8x1xf32>
    %166 = tpu.reciprocal %165 {approx = true} : vector<8x1xf32> -> vector<8x1xf32>
    %167 = vector.broadcast %166 : vector<8x1xf32> to vector<8x5xf32>
    %168 = arith.mulf %163, %167 : vector<8x5xf32>
    %169 = vector.extract_strided_slice %32 {offsets = [0, 25], sizes = [8, 5], strides = [1, 1]} : vector<8x30xf32> to vector<8x5xf32>
    %cst_47 = arith.constant dense<0xFF800000> : vector<8xf32>
    %170 = vector.multi_reduction <maximumf>, %169, %cst_47 [1] : vector<8x5xf32> to vector<8xf32>
    %171 = vector.shape_cast %170 : vector<8xf32> to vector<8x1xf32>
    %172 = vector.broadcast %171 : vector<8x1xf32> to vector<8x5xf32>
    %173 = arith.subf %169, %172 : vector<8x5xf32>
    %174 = math.exp %173 : vector<8x5xf32>
    %cst_48 = arith.constant dense<0.000000e+00> : vector<8xf32>
    %175 = vector.multi_reduction <add>, %174, %cst_48 [1] : vector<8x5xf32> to vector<8xf32>
    %176 = vector.shape_cast %175 : vector<8xf32> to vector<8x1xf32>
    %177 = tpu.reciprocal %176 {approx = true} : vector<8x1xf32> -> vector<8x1xf32>
    %178 = vector.broadcast %177 : vector<8x1xf32> to vector<8x5xf32>
    %179 = arith.mulf %174, %178 : vector<8x5xf32>
    %180 = tpu.concatenate %124, %135, %146, %157, %168, %179 in 1 : vector<8x5xf32>, vector<8x5xf32>, vector<8x5xf32>, vector<8x5xf32>, vector<8x5xf32>, vector<8x5xf32> -> vector<8x30xf32>
    %c688 = arith.constant 688 : index
    %c0_49 = arith.constant 0 : index
    %181 = vector.load %arg3[%c688, %c0_49] : memref<1376x384xbf16, #tpu.memory_space<vmem>>, vector<30x90xbf16>
    %c4 = arith.constant 4 : index
    %c0_50 = arith.constant 0 : index
    %182 = vector.load %arg4[%c4, %c0_50] : memref<8x384xf32, #tpu.memory_space<vmem>>, vector<1x90xf32>
    %183 = arith.truncf %113 : vector<8x30xf32> to vector<8x30xbf16>
    %cst_51 = arith.constant dense<0.000000e+00> : vector<8x90xf32>
    %184 = tpu.matmul %183, %181, %cst_51 {dimension_numbers = #tpu.dot_dimension_numbers<[1], [0], [0], [1], [0, 0, 1, 1], [], []>} : vector<8x30xbf16>, vector<30x90xbf16>, vector<8x90xf32> -> vector<8x90xf32>
    %185 = vector.broadcast %182 : vector<1x90xf32> to vector<8x90xf32>
    %186 = arith.addf %184, %185 : vector<8x90xf32>
    %cst_52 = arith.constant 0.000000e+00 : f32
    %187 = vector.broadcast %cst_52 : f32 to vector<8x90xf32>
    %188 = arith.maximumf %186, %187 : vector<8x90xf32>
    %c720 = arith.constant 720 : index
    %c0_53 = arith.constant 0 : index
    %189 = vector.load %arg3[%c720, %c0_53] : memref<1376x384xbf16, #tpu.memory_space<vmem>>, vector<90x180xbf16>
    %c5 = arith.constant 5 : index
    %c0_54 = arith.constant 0 : index
    %190 = vector.load %arg4[%c5, %c0_54] : memref<8x384xf32, #tpu.memory_space<vmem>>, vector<1x180xf32>
    %191 = arith.truncf %188 : vector<8x90xf32> to vector<8x90xbf16>
    %cst_55 = arith.constant dense<0.000000e+00> : vector<8x180xf32>
    %192 = tpu.matmul %191, %189, %cst_55 {dimension_numbers = #tpu.dot_dimension_numbers<[1], [0], [0], [1], [0, 0, 1, 1], [], []>} : vector<8x90xbf16>, vector<90x180xbf16>, vector<8x180xf32> -> vector<8x180xf32>
    %193 = vector.broadcast %190 : vector<1x180xf32> to vector<8x180xf32>
    %194 = arith.addf %192, %193 : vector<8x180xf32>
    %cst_56 = arith.constant 0.000000e+00 : f32
    %195 = vector.broadcast %cst_56 : f32 to vector<8x180xf32>
    %196 = arith.maximumf %194, %195 : vector<8x180xf32>
    %c816 = arith.constant 816 : index
    %c0_57 = arith.constant 0 : index
    %197 = vector.load %arg3[%c816, %c0_57] : memref<1376x384xbf16, #tpu.memory_space<vmem>>, vector<180x360xbf16>
    %c6 = arith.constant 6 : index
    %c0_58 = arith.constant 0 : index
    %198 = vector.load %arg4[%c6, %c0_58] : memref<8x384xf32, #tpu.memory_space<vmem>>, vector<1x360xf32>
    %199 = arith.truncf %196 : vector<8x180xf32> to vector<8x180xbf16>
    %cst_59 = arith.constant dense<0.000000e+00> : vector<8x360xf32>
    %200 = tpu.matmul %199, %197, %cst_59 {dimension_numbers = #tpu.dot_dimension_numbers<[1], [0], [0], [1], [0, 0, 1, 1], [], []>} : vector<8x180xbf16>, vector<180x360xbf16>, vector<8x360xf32> -> vector<8x360xf32>
    %201 = vector.broadcast %198 : vector<1x360xf32> to vector<8x360xf32>
    %202 = arith.addf %200, %201 : vector<8x360xf32>
    %cst_60 = arith.constant 0.000000e+00 : f32
    %203 = vector.broadcast %cst_60 : f32 to vector<8x360xf32>
    %204 = arith.maximumf %202, %203 : vector<8x360xf32>
    %c1008 = arith.constant 1008 : index
    %c0_61 = arith.constant 0 : index
    %205 = vector.load %arg3[%c1008, %c0_61] : memref<1376x384xbf16, #tpu.memory_space<vmem>>, vector<360x24xbf16>
    %c7 = arith.constant 7 : index
    %c0_62 = arith.constant 0 : index
    %206 = vector.load %arg4[%c7, %c0_62] : memref<8x384xf32, #tpu.memory_space<vmem>>, vector<1x24xf32>
    %207 = arith.truncf %204 : vector<8x360xf32> to vector<8x360xbf16>
    %cst_63 = arith.constant dense<0.000000e+00> : vector<8x24xf32>
    %208 = tpu.matmul %207, %205, %cst_63 {dimension_numbers = #tpu.dot_dimension_numbers<[1], [0], [0], [1], [0, 0, 1, 1], [], []>} : vector<8x360xbf16>, vector<360x24xbf16>, vector<8x24xf32> -> vector<8x24xf32>
    %209 = vector.broadcast %206 : vector<1x24xf32> to vector<8x24xf32>
    %210 = arith.addf %208, %209 : vector<8x24xf32>
    %cst_64 = arith.constant 0.000000e+00 : f32
    %211 = vector.broadcast %cst_64 : f32 to vector<8x128xf32>
    %c0_65 = arith.constant 0 : index
    %c0_66 = arith.constant 0 : index
    %212 = vector.load %arg5[%c0_65, %c0_66] : memref<8x128xf32, #tpu.memory_space<vmem>>, vector<8x128xf32>
    tpu.vector_store %arg5[%c0_65, %c0_66], %211 {strides = array<i32>} : memref<8x128xf32, #tpu.memory_space<vmem>>, vector<8x128xf32>,
    %c0_67 = arith.constant 0 : index
    %c0_68 = arith.constant 0 : index
    %213 = vector.load %arg5[%c0_67, %c0_68] : memref<8x128xf32, #tpu.memory_space<vmem>>, vector<8x24xf32>
    tpu.vector_store %arg5[%c0_67, %c0_68], %210 {strides = array<i32>} : memref<8x128xf32, #tpu.memory_space<vmem>>, vector<8x24xf32>,
    %c0_69 = arith.constant 0 : index
    %c64 = arith.constant 64 : index
    %214 = vector.load %arg5[%c0_69, %c64] : memref<8x128xf32, #tpu.memory_space<vmem>>, vector<8x30xf32>
    tpu.vector_store %arg5[%c0_69, %c64], %180 {strides = array<i32>} : memref<8x128xf32, #tpu.memory_space<vmem>>, vector<8x30xf32>,
    return
  }
  func.func @transform_0(%arg0: i32) -> (i32, i32) {
    %c0_i32 = arith.constant 0 : i32
    %c0_i32_0 = arith.constant 0 : i32
    return %arg0, %c0_i32 : i32, i32
  }
  func.func @transform_1(%arg0: i32) -> (i32, i32) {
    %c0_i32 = arith.constant 0 : i32
    %c0_i32_0 = arith.constant 0 : i32
    return %arg0, %c0_i32 : i32, i32
  }
  func.func @transform_2(%arg0: i32) -> (i32, i32) {
    %c0_i32 = arith.constant 0 : i32
    %c0_i32_0 = arith.constant 0 : i32
    %c0_i32_1 = arith.constant 0 : i32
    return %c0_i32, %c0_i32_0 : i32, i32
  }
  func.func @transform_3(%arg0: i32) -> (i32, i32) {
    %c0_i32 = arith.constant 0 : i32
    %c0_i32_0 = arith.constant 0 : i32
    %c0_i32_1 = arith.constant 0 : i32
    return %c0_i32, %c0_i32_0 : i32, i32
  }
  func.func @transform_4(%arg0: i32) -> (i32, i32) {
    %c0_i32 = arith.constant 0 : i32
    %c0_i32_0 = arith.constant 0 : i32
    return %arg0, %c0_i32 : i32, i32
  }
}

</mosaic_0001>

<bundles_post_ra>
// kernel: gumbel_vae_forward.1
= control target key start
LH: loop header
LB: loop body
LE: loop exit
PB: predicated region body
PF: predicated region fallthrough
CT: control target
= control target key end

     0   :  { %9 = vsyncpa [#allocation3], 0  ;;  %s2692_s0 = inlined_call_operand.vmem [shape: f32[8,24], index: 0, kind: input, shape index: {}]   ;;  %s2693_s1 = inlined_call_operand.vmem [shape: f32[8,30], index: 1, kind: input, shape index: {}]   ;;  %s2694_s2 = inlined_call_operand.hbm [shape: bf16[1376,384], index: 2, kind: input, shape index: {}]   ;;  %s2695_s3 = inlined_call_operand.hbm [shape: f32[8,384], index: 3, kind: input, shape index: {}]   ;;  %s2696_s4 = inlined_call_operand.vmem [shape: f32[8,128], index: 4, kind: output, shape index: {}]  }
   0x1   :  { %10 = vsyncpa [#allocation5], 0  ;;  %s2401_s15 = smov [#allocation2]   ;;  %s2353_s19 = scalar_lea.hbm %s2694_s2, 33024 }
   0x2   :  { %s20_s16 = sshll.u32 %s2401_s15, 4  ;;  %p2354_p0 = scmp.ne.s32.totalorder %s2694_s2, %s2353_s19  ;;  %s21_s16 = int_to_ptr.vmem [resolvable:$true] %s20_s16 }
   0x3   :  { %p2357_p1 = scmp.lt.u32.totalorder %s2353_s19, %s2694_s2 }
   0x5   :  { %p2359_p2 = pnand %p2357_p1, %p2354_p0 }
   0x7   :  { %2362 = shalt.err (!%p2359_p2)
}
   0x8   :  { %s2363_s24 = scalar_lea.vmem %s21_s16, 33024  ;;  %p2368_p4 = scmp.lt.s32.totalorder %s21_s16, %s21_s16 }
   0x9   :  { %p2364_p3 = scmp.ne.s32.totalorder %s21_s16, %s2363_s24  ;;  %p2369_p5 = scmp.lt.s32.totalorder %s2363_s24, %s2363_s24 }
   0xb   :  { %p2370_p6 = por %p2369_p5, %p2368_p4 }
   0xd   :  { %p2371_p7 = pnand %p2370_p6, %p2364_p3 }
   0xf   :  { %2374 = shalt.err (!%p2371_p7)
}
  0x10   :  { %s2402_s25 = smov 192   ;;  %s2403_s26 = smov 12  }
  0x11   :  { %26 = dma.hbm_to_vmem [thread:$0]  %s2694_s2, 33024, %s21_s16, [#allocation3], %s2402_s25, %s2402_s25, %s2403_s26  }
  0x12   :  { %s2404_s29 = smov [#allocation4]   ;;  %s2375_s7 = scalar_lea.hbm %s2695_s3, 384 }
  0x13   :  { %s33_s30 = sshll.u32 %s2404_s29, 4  ;;  %p2376_p8 = scmp.ne.s32.totalorder %s2695_s3, %s2375_s7  ;;  %s34_s30 = int_to_ptr.vmem [resolvable:$true] %s33_s30 }
  0x14   :  { %p2379_p9 = scmp.lt.u32.totalorder %s2375_s7, %s2695_s3 }
  0x16   :  { %p2381_p10 = pnand %p2379_p9, %p2376_p8 }
  0x18   :  { %2384 = shalt.err (!%p2381_p10)
}
  0x19   :  { %s2385_s12 = scalar_lea.vmem %s34_s30, 384  ;;  %p2390_p12 = scmp.lt.s32.totalorder %s34_s30, %s34_s30 }
  0x1a   :  { %p2386_p11 = scmp.ne.s32.totalorder %s34_s30, %s2385_s12  ;;  %p2391_p13 = scmp.lt.s32.totalorder %s2385_s12, %s2385_s12 }
  0x1c   :  { %p2392_p0 = por %p2391_p13, %p2390_p12 }
  0x1e   :  { %p2393_p1 = pnand %p2392_p0, %p2386_p11 }
  0x20   :  { %2396 = shalt.err (!%p2393_p1)
}
  0x21   :  { %36 = dma.hbm_to_vmem [thread:$0]  %s2695_s3, 384, %s34_s30, [#allocation5]  }
  0x22   :  { %2397 = dma.done.wait [#allocation3], 33024  }
  0x23   :  { %2398 = vsyncadd [#allocation3], 4294934272 }
  0x24   :  { %2399 = dma.done.wait [#allocation5], 384  }
  0x25   :  { %2400 = vsyncadd [#allocation5], 4294966912  ;;  %v2405_v0 = vmov 0   ;;  %v2406_v1 = vmov 0.0   ;;  %vm2407_vm0 = vmmov 0   ;;  %v49_v4 = vld [vmem:[#allocation2 + $0x18] sm:$0xff]  ;;  %v54_v56 = vlaneseq }
  0x26   :  { %139 = vmatprep.mubr.bf16.mxu0 %v2405_v0  ;;  %2048 = vmatprep.subr.bf16.mxu1 %v2406_v1  ;;  %1834 = vst [vmem:[%s2696_s4] sm:$0xff] %v2406_v1  ;;  %v2117_v2 = vld [vmem:[#allocation2 + $0x4] ss:$12 sps:$4 sm:$0xff]   ;;  %v2119_v3 = vld [vmem:[#allocation2] ss:$12 sps:$4 sm:$0xff]   ;;  %vm97_vm1 = vcmask 1043456   ;;  %v1852_v6 = vcombine.high %v49_v4, %v49_v4  ;;  %v1851_v7 = vcombine.low %v49_v4, %v49_v4  ;;  %vm93_vm2 = vcmask 195584  }
  0x27   :  { %2052 = vmatprep.mubr.msk.bf16.mxu1 %vm2407_vm0, %v2406_v1  ;;  %v44_v5 = vld [vmem:[%s2692_s0] sm:$0xff]  ;;  %107 = vmatprep.subr.bf16.mxu0 %v2117_v2  ;;  %v2122_v8 = vld [vmem:[#allocation2 + $0x8] ss:$12 sps:$4 sm:$0xff]   ;;  %v2124_v14 = vld [vmem:[#allocation2 + $0x30] ss:$12 sps:$4 sm:$0xff]   ;;  %v2491_v57 = vshrl.u32 %v54_v56, 7 }
  0x28   :  { %108 = vmatpush1.bf16.msra.mxu0 %v2119_v3  ;;  %v2123_v9 = vld [vmem:[#allocation2 + $0x20] ss:$0 sps:$4 sm:$0xff]   ;;  %v99_v10 = vsel %vm97_vm1, %v1851_v7, 0  ;;  %2049 = vmatpush3.bf16.msra.mxu1 %v2122_v8  ;;  %v52_v13 = vpack.c.bf16 %v44_v5, %v44_v5  ;;  %v2129_v15 = vld [vmem:[#allocation2 + $0x4c] ss:$12 sps:$4 sm:$0xff]   ;;  %vm477_vm3 = vcmask 850944  }
  0x29   :  { %1854 = vmatprep.subr.msk.bf16.mxu0 %vm97_vm1, %v1852_v6  ;;  %v2126_v11 = vld [vmem:[#allocation2 + $0x34] ss:$12 sps:$4 sm:$0xff]   ;;  %2050 = vmatprep.subr.bf16.mxu1 %v2406_v1  ;;  %v105_v12 = vsel %vm97_vm1, %v2123_v9, 0  ;;  %v2132_v17 = vld [vmem:[#allocation2 + $0x64] ss:$12 sps:$4 sm:$0xff]   ;;  %v2494_v58 = vsub.s32 0, %v2491_v57 }
  0x2a   :  { %v2127_v16 = vld [vmem:[#allocation2 + $0x48] ss:$12 sps:$4 sm:$0xff]   ;;  %v2130_v18 = vld [vmem:[#allocation2 + $0x60] ss:$12 sps:$4 sm:$0xff]   ;;  %v2133_v20 = vld [vmem:[#allocation2 + $0x78] ss:$12 sps:$4 sm:$0xff]  }
  0x2b   :  { %v2135_v19 = vld [vmem:[#allocation2 + $0x7c] ss:$12 sps:$4 sm:$0xff]   ;;  %v2138_v21 = vld [vmem:[#allocation2 + $0x94] ss:$12 sps:$4 sm:$0xff]   ;;  %v2141_v23 = vld [vmem:[#allocation2 + $0xac] ss:$12 sps:$4 sm:$0xff]  }
  0x2c   :  { %110 = vmatpush1.bf16.msra.mxu0 %v99_v10  ;;  %2051 = vmatpush3.bf16.msra.mxu1 %v105_v12  ;;  %v2136_v22 = vld [vmem:[#allocation2 + $0x90] ss:$12 sps:$4 sm:$0xff]   ;;  %v2139_v24 = vld [vmem:[#allocation2 + $0xa8] ss:$12 sps:$4 sm:$0xff]   ;;  %v2142_v26 = vld [vmem:[#allocation2 + $0xc0] ss:$12 sps:$4 sm:$0xff]  }
  0x2d   :  { %487 = vmatprep.subr.bf16.mxu0 %v2126_v11  ;;  %674 = vmatprep.subr.bf16.mxu1 %v2405_v0  ;;  %v2144_v25 = vld [vmem:[#allocation2 + $0xc4] ss:$12 sps:$4 sm:$0xff]   ;;  %v2147_v27 = vld [vmem:[#allocation2 + $0xdc] ss:$12 sps:$4 sm:$0xff]   ;;  %v2150_v29 = vld [vmem:[#allocation2 + $0xf4] ss:$12 sps:$4 sm:$0xff]  }
  0x2e   :  { %v2145_v28 = vld [vmem:[#allocation2 + $0xd8] ss:$12 sps:$4 sm:$0xff]   ;;  %v2148_v30 = vld [vmem:[#allocation2 + $0xf0] ss:$12 sps:$4 sm:$0xff]   ;;  %v2151_v32 = vld [vmem:[#allocation2 + $0x108] ss:$12 sps:$4 sm:$0xff]  }
  0x2f   :  { %1855 = vmatmul.mubr.msk.bf16.vlgmr.msra.gmra.mrb[0].mxu0 %vm93_vm2, %v52_v13  ;;  %2053 = vmatmul.mubr.msk.bf16.vlgmr.msra.gmra.mrb[0].mxu1 %vm93_vm2, %v52_v13  ;;  %v2153_v31 = vld [vmem:[#allocation2 + $0x10c] ss:$12 sps:$4 sm:$0xff]   ;;  %v2156_v33 = vld [vmem:[#allocation2 + $0x124] ss:$12 sps:$4 sm:$0xff]   ;;  %v2159_v35 = vld [vmem:[#allocation2 + $0x13c] ss:$12 sps:$4 sm:$0xff]  }
  0x30   :  { %488 = vmatpush1.bf16.msra.mxu0 %v2124_v14  ;;  %v2154_v34 = vld [vmem:[#allocation2 + $0x120] ss:$12 sps:$4 sm:$0xff]   ;;  %v2157_v36 = vld [vmem:[#allocation2 + $0x138] ss:$12 sps:$4 sm:$0xff]   ;;  %v2160_v38 = vld [vmem:[#allocation2 + $0x150] ss:$12 sps:$4 sm:$0xff]  }
  0x31   :  { %489 = vmatprep.subr.bf16.mxu0 %v2129_v15  ;;  %v2162_v37 = vld [vmem:[#allocation2 + $0x154] ss:$12 sps:$4 sm:$0xff]   ;;  %v2165_v39 = vld [vmem:[#allocation2 + $0x16c] ss:$12 sps:$4 sm:$0xff]   ;;  %v2168_v41 = vld [vmem:[#allocation2 + $0x184] ss:$12 sps:$4 sm:$0xff]  }
  0x32   :  { %v2163_v40 = vld [vmem:[#allocation2 + $0x168] ss:$12 sps:$4 sm:$0xff]   ;;  %v2166_v42 = vld [vmem:[#allocation2 + $0x180] ss:$12 sps:$4 sm:$0xff]   ;;  %v2169_v44 = vld [vmem:[#allocation2 + $0x198] ss:$12 sps:$4 sm:$0xff]  }
  0x33   :  { %v2171_v43 = vld [vmem:[#allocation2 + $0x19c] ss:$12 sps:$4 sm:$0xff]   ;;  %v2174_v45 = vld [vmem:[#allocation2 + $0x1b4] ss:$12 sps:$4 sm:$0xff]   ;;  %v2192_v46 = vld [vmem:[#allocation2 + $0x258] ss:$12 sps:$4 sm:$0xff]  }
  0x34   :  { %490 = vmatpush1.bf16.msra.mxu0 %v2127_v16  ;;  %675 = vmatpush1.bf16.msra.mxu1 %v2192_v46  ;;  %v2193_v47 = vld [vmem:[#allocation2 + $0x270] ss:$12 sps:$4 sm:$0xff]   ;;  %v2194_v48 = vld [vmem:[#allocation2 + $0x288] ss:$12 sps:$4 sm:$0xff]   ;;  %v2195_v49 = vld [vmem:[#allocation2 + $0x2a0] ss:$12 sps:$4 sm:$0xff]  }
  0x35   :  { %491 = vmatprep.subr.bf16.mxu0 %v2132_v17  ;;  %676 = vmatprep.subr.bf16.mxu1 %v2405_v0  ;;  %v2196_v50 = vld [vmem:[#allocation2 + $0x2b8] ss:$12 sps:$4 sm:$0xff]   ;;  %v2197_v51 = vld [vmem:[#allocation2 + $0x2d0] ss:$12 sps:$4 sm:$0xff]   ;;  %v2198_v52 = vld [vmem:[#allocation2 + $0x2e8] ss:$12 sps:$4 sm:$0xff]  }
  0x36   :  { %v2199_v53 = vld [vmem:[#allocation2 + $0x300] ss:$12 sps:$4 sm:$0xff]   ;;  %v2200_v54 = vld [vmem:[#allocation2 + $0x318] ss:$12 sps:$4 sm:$0xff]   ;;  %v2201_v55 = vld [vmem:[#allocation2 + $0x330] ss:$12 sps:$4 sm:$0xff]  }
  0x37   :  { %v51_v59 = vld [vmem:[#allocation4] ss:$8 sm:$0x7]  ;;  %v2497_v60 = vsub.s32 1, %v2491_v57  ;;  %v2175_v17 = vld [vmem:[#allocation2 + $0x1c8] ss:$12 sps:$4 sm:$0xff]  }
  0x38   :  { %492 = vmatpush1.bf16.msra.mxu0 %v2130_v18  ;;  %677 = vmatpush1.bf16.msra.mxu1 %v2193_v47  ;;  %v57_v61 = vrot.slane %v51_v59, %v2494_v58  ;;  %v2172_v14 = vld [vmem:[#allocation2 + $0x1b0] ss:$12 sps:$4 sm:$0xff]   ;;  %v2177_v16 = vld [vmem:[#allocation2 + $0x1cc] ss:$12 sps:$4 sm:$0xff]   ;;  %vm670_vm4 = vcmask 1041408   ;;  %vm666_vm5 = vcmask 424960  }
  0x39   :  { %493 = vmatprep.subr.bf16.mxu0 %v2135_v19  ;;  %678 = vmatprep.subr.bf16.mxu1 %v2405_v0  ;;  %v61_v62 = vrot.slane %v51_v59, %v2497_v60  ;;  %v2180_v18 = vld [vmem:[#allocation2 + $0x1e4] ss:$12 sps:$4 sm:$0xff]   ;;  %v2178_v19 = vld [vmem:[#allocation2 + $0x1e0] ss:$12 sps:$4 sm:$0xff]   ;;  %vm768_vm6 = vcmask 1044480   ;;  %vm764_vm7 = vcmask 736256  }
  0x3a   :  { %v2209_v56 = vld [vmem:[#allocation2 + $0x3f0] ss:$12 sps:$4 sm:$0x1f]   ;;  %vm868_vm8 = vcmask 162936   ;;  %vm836_vm9 = vcmask 80936   ;;  %vm884_vm10 = vcmask 203936  }
  0x3b   :  { %vm852_vm11 = vcmask 121936   ;;  %vm900_vm12 = vcmask 244936   ;;  %vm824_vm13 = vcmask 39936   ;;  %s2409_s18 = smov 118   ;;  %s2410_s19 = smov 103   ;;  %vm1037_vm14 = vcmask 1046528  }
  0x3c   :  { %494 = vmatpush1.bf16.msra.mxu0 %v2133_v20  ;;  %679 = vmatpush1.bf16.msra.mxu1 %v2194_v48  ;;  %v2183_v20 = vld [vmem:[#allocation2 + $0x1fc] ss:$12 sps:$4 sm:$0xff]   ;;  %s2411_s20 = smov 113   ;;  %s2412_s21 = smov 108   ;;  %vm917_vm15 = vcmask 80896  }
  0x3d   :  { %495 = vmatprep.subr.bf16.mxu0 %v2138_v21  ;;  %680 = vmatprep.subr.bf16.mxu1 %v2405_v0  ;;  %v64_v21 = vsub.s32 2, %v2491_v57  ;;  %s2413_s24 = smov 64  }
  0x40   :  { %496 = vmatpush1.bf16.msra.mxu0 %v2136_v22  ;;  %681 = vmatpush1.bf16.msra.mxu1 %v2195_v49  ;;  %v2181_v22 = vld [vmem:[#allocation2 + $0x1f8] ss:$12 sps:$4 sm:$0xff]  }
  0x41   :  { %497 = vmatprep.subr.bf16.mxu0 %v2141_v23  ;;  %682 = vmatprep.subr.bf16.mxu1 %v2405_v0  ;;  %v2186_v23 = vld [vmem:[#allocation2 + $0x214] ss:$12 sps:$4 sm:$0xff]  }
  0x44   :  { %498 = vmatpush1.bf16.msra.mxu0 %v2139_v24  ;;  %683 = vmatpush1.bf16.msra.mxu1 %v2196_v50  ;;  %v65_v24 = vrot.slane %v51_v59, %v64_v21  ;;  %v2204_v50 = vld [vmem:[#allocation2 + $0x378] ss:$12 sps:$4 sm:$0xff]   ;;  %v770_v59 = vsel %vm768_vm6, %v2209_v56, 0 }
  0x45   :  { %499 = vmatprep.subr.bf16.mxu0 %v2144_v25  ;;  %684 = vmatprep.subr.bf16.mxu1 %v2405_v0  ;;  %v2184_v25 = vld [vmem:[#allocation2 + $0x210] ss:$12 sps:$4 sm:$0xff]  }
  0x48   :  { %500 = vmatpush1.bf16.msra.mxu0 %v2142_v26  ;;  %685 = vmatpush1.bf16.msra.mxu1 %v2197_v51  ;;  %v2189_v26 = vld [vmem:[#allocation2 + $0x22c] ss:$12 sps:$4 sm:$0xff]  }
  0x49   :  { %501 = vmatprep.subr.bf16.mxu0 %v2147_v27  ;;  %686 = vmatprep.subr.bf16.mxu1 %v2405_v0  ;;  %v235_v27 = vld [vmem:[#allocation2 + $0x240] sm:$0xff] }
  0x4c   :  { %502 = vmatpush1.bf16.msra.mxu0 %v2145_v28  ;;  %687 = vmatpush1.bf16.msra.mxu1 %v2198_v52  ;;  %v2205_v52 = vld [vmem:[#allocation2 + $0x390] ss:$12 sps:$4 sm:$0xff]  }
  0x4d   :  { %503 = vmatprep.subr.bf16.mxu0 %v2150_v29  ;;  %688 = vmatprep.subr.bf16.mxu1 %v2405_v0  ;;  %v2187_v29 = vld [vmem:[#allocation2 + $0x228] ss:$12 sps:$4 sm:$0xff]  }
  0x50   :  { %504 = vmatpush1.bf16.msra.mxu0 %v2148_v30  ;;  %689 = vmatpush1.bf16.msra.mxu1 %v2199_v53  ;;  %v1902_v30 = vcombine.high %v235_v27, %v235_v27  ;;  %v2206_v53 = vld [vmem:[#allocation2 + $0x3a8] ss:$12 sps:$4 sm:$0xff]  }
  0x51   :  { %505 = vmatprep.subr.bf16.mxu0 %v2153_v31  ;;  %690 = vmatprep.subr.bf16.mxu1 %v2405_v0  ;;  %v1901_v31 = vcombine.low %v235_v27, %v235_v27 }
  0x54   :  { %506 = vmatpush1.bf16.msra.mxu0 %v2151_v32  ;;  %691 = vmatpush1.bf16.msra.mxu1 %v2200_v54  ;;  %v2207_v54 = vld [vmem:[#allocation2 + $0x3c0] ss:$12 sps:$4 sm:$0xff]  }
  0x55   :  { %507 = vmatprep.subr.bf16.mxu0 %v2156_v33  ;;  %692 = vmatprep.subr.bf16.mxu1 %v2405_v0  ;;  %v482_v33 = vsel %vm97_vm1, %v1901_v31, 0 }
  0x58   :  { %508 = vmatpush1.bf16.msra.mxu0 %v2154_v34  ;;  %693 = vmatpush1.bf16.msra.mxu1 %v2201_v55  ;;  %v2208_v55 = vld [vmem:[#allocation2 + $0x3d8] ss:$12 sps:$4 sm:$0xff]  }
  0x59   :  { %509 = vmatprep.subr.bf16.mxu0 %v2159_v35  ;;  %694 = vmatprep.subr.bf16.mxu1 %v2405_v0  ;;  %v2202_v35 = vld [vmem:[#allocation2 + $0x348] ss:$12 sps:$4 sm:$0xff]  }
  0x5c   :  { %510 = vmatpush1.bf16.msra.mxu0 %v2157_v36  ;;  %695 = vmatpush1.bf16.msra.mxu1 %v2202_v35  ;;  %v2203_v36 = vld [vmem:[#allocation2 + $0x360] ss:$0 sps:$4 sm:$0x33]  }
  0x5d   :  { %511 = vmatprep.subr.bf16.mxu0 %v2162_v37  ;;  %696 = vmatprep.subr.bf16.mxu1 %v2405_v0  ;;  %v672_v37 = vsel %vm670_vm4, %v2203_v36, 0 }
  0x60   :  { %512 = vmatpush1.bf16.msra.mxu0 %v2160_v38  ;;  %697 = vmatpush1.bf16.msra.mxu1 %v672_v37  ;;  %v237_v38 = vld [vmem:[#allocation4 + $0x1] ss:$8 sm:$0x3] }
  0x61   :  { %513 = vmatprep.subr.bf16.mxu0 %v2165_v39  ;;  %2056 = vmatprep.subr.bf16.mxu1 %v2406_v1  ;;  %v245_v39 = vrot.slane %v237_v38, %v2494_v58 }
  0x64   :  { %514 = vmatpush1.bf16.msra.mxu0 %v2163_v40  ;;  %v249_v40 = vrot.slane %v237_v38, %v2497_v60 }
  0x65   :  { %515 = vmatprep.subr.bf16.mxu0 %v2168_v41 }
  0x68   :  { %516 = vmatpush1.bf16.msra.mxu0 %v2166_v42 }
  0x69   :  { %517 = vmatprep.subr.bf16.mxu0 %v2171_v43 }
  0x6c   :  { %518 = vmatpush1.bf16.msra.mxu0 %v2169_v44 }
  0x6d   :  { %528 = vmatprep.subr.bf16.mxu0 %v2174_v45 }
 0x102   :  { %v141_v63 = vpop.f32.mrb[0].mxu0  ;;  %v182_v4 = vpop.f32.mrb[0].mxu1 }
 0x103   :  { %v142_v2 = vadd.f32 %v141_v63, %v57_v61  ;;  %v143_v3 = vpop.f32.mrb[1].mxu0  ;;  %v2054_v7 = vpop.f32.mrb[1].mxu1  ;;  %v183_v28 = vadd.f32 %v182_v4, %v65_v24  ;;  %v594_v61 = vld [vmem:[#allocation4 + $0x2] ss:$0 sm:$0xff] }
 0x104   :  { %v144_v5 = vadd.f32 %v143_v3, %v61_v62  ;;  %v145_v6 = vpop.f32.mrb[2].mxu0  ;;  %v185_v10 = vpop.f32.mrb[2].mxu1  ;;  %v813_v7 = vld [vmem:[%s2693_s1] sm:$0xff]  ;;  %s2408_s1 = smov 123  }
 0x105   :  { %v188_v8 = vmax.f32 %v142_v2, 0.0  ;;  %v146_v9 = vpop.f32.mrb[3].mxu0  ;;  %v2055_v12 = vpop.f32.mrb[3].mxu1  ;;  %v190_v32 = vmax.f32 %v183_v28, 0.0 }
 0x106   :  { %v189_v11 = vmax.f32 %v144_v5, 0.0 }
 0x107   :  { %v238_v15 = vpack.c.bf16 %v188_v8, %v188_v8  ;;  %v240_v34 = vpack.c.bf16 %v190_v32, %v190_v32  ;;  %v814_v8 = vadd.f32 1e-20, %v813_v7 }
 0x108   :  { %v239_v13 = vpack.c.bf16 %v189_v11, %v189_v11 }
 0x109   :  { %2300 = vlog2.f32 %v814_v8 }
 0x10a   :  { %519 = vmatprep.mubr.bf16.mxu0 %v239_v13 }
 0x10b   :  { %520 = vmatmul.mubr.bf16.vlgmr.msra.gmra.mrb[4].mxu0 %v238_v15  ;;  %v727_v15 = vld [vmem:[#allocation4 + $0x3] ss:$0 sm:$0xff] }
 0x10c   :  { %529 = vmatpush1.bf16.msra.mxu0 %v2172_v14  ;;  %560 = vmatprep.mubr.bf16.mxu0 %v2405_v0 }
 0x10d   :  { %530 = vmatprep.subr.bf16.mxu0 %v2177_v16 }
 0x110   :  { %531 = vmatpush1.bf16.msra.mxu0 %v2175_v17 }
 0x111   :  { %532 = vmatprep.subr.bf16.mxu0 %v2180_v18 }
 0x113   :  { %v2301_v9 = vpop.eup %2300 }
 0x114   :  { %533 = vmatpush1.bf16.msra.mxu0 %v2178_v19  ;;  %v816_v10 = vmul.f32 0.6931472, %v2301_v9 }
 0x115   :  { %534 = vmatprep.subr.bf16.mxu0 %v2183_v20 }
 0x116   :  { %v817_v11 = vsub.f32 0.0, %v816_v10 }
 0x118   :  { %535 = vmatpush1.bf16.msra.mxu0 %v2181_v22  ;;  %v818_v12 = vadd.f32 1e-20, %v817_v11 }
 0x119   :  { %536 = vmatprep.subr.bf16.mxu0 %v2186_v23 }
 0x11a   :  { %2302 = vlog2.f32 %v818_v12 }
 0x11c   :  { %537 = vmatpush1.bf16.msra.mxu0 %v2184_v25 }
 0x11d   :  { %538 = vmatprep.subr.bf16.mxu0 %v2189_v26 }
 0x120   :  { %539 = vmatpush1.bf16.msra.mxu0 %v2187_v29 }
 0x121   :  { %1903 = vmatprep.subr.msk.bf16.mxu0 %vm97_vm1, %v1902_v30 }
 0x124   :  { %541 = vmatpush1.bf16.msra.mxu0 %v482_v33  ;;  %v2303_v13 = vpop.eup %2302 }
 0x125   :  { %v820_v14 = vmul.f32 0.6931472, %v2303_v13  ;;  %v2210_v13 = vld [vmem:[#allocation2 + $0x408] ss:$12 sps:$4 sm:$0xff]  }
 0x127   :  { %1904 = vmatmul.mubr.msk.bf16.vlgmr.msra.gmra.mrb[4].mxu0 %vm477_vm3, %v240_v34  ;;  %v821_v19 = vsub.f32 0.0, %v820_v14  ;;  %v2579_v14 = vld [vmem:[%s2696_s4] sm:$0xff] }
 0x1fa   :  { %v562_v41 = vpop.f32.mrb[4].mxu0 }
 0x1fb   :  { %v2098_v42 = vadd.f32 %v562_v41, %v245_v39  ;;  %v564_v43 = vpop.f32.mrb[5].mxu0 }
 0x1fc   :  { %v2099_v44 = vadd.f32 %v564_v43, %v249_v40  ;;  %v566_v45 = vpop.f32.mrb[6].mxu0 }
 0x1fd   :  { %v569_v46 = vmax.f32 %v2098_v42, 0.0  ;;  %v567_v47 = vpop.f32.mrb[7].mxu0 }
 0x1fe   :  { %v570_v48 = vmax.f32 %v2099_v44, 0.0 }
 0x1ff   :  { %v595_v51 = vpack.c.bf16 %v569_v46, %v569_v46 }
 0x200   :  { %v596_v49 = vpack.c.bf16 %v570_v48, %v570_v48 }
 0x202   :  { %1917 = vmatprep.mubr.msk.bf16.mxu1 %vm666_vm5, %v596_v49 }
 0x203   :  { %707 = vmatmul.mubr.bf16.vlgmr.msra.gmra.mrb[4].mxu1 %v595_v51 }
 0x204   :  { %2057 = vmatpush3.bf16.msra.mxu1 %v2204_v50  ;;  %2068 = vmatprep.mubr.msk.bf16.mxu1 %vm2407_vm0, %v2406_v1 }
 0x205   :  { %2058 = vmatprep.subr.bf16.mxu1 %v2406_v1 }
 0x208   :  { %2059 = vmatpush3.bf16.msra.mxu1 %v2205_v52 }
 0x209   :  { %2060 = vmatprep.subr.bf16.mxu1 %v2406_v1 }
 0x20c   :  { %2061 = vmatpush3.bf16.msra.mxu1 %v2206_v53 }
 0x20d   :  { %2062 = vmatprep.subr.bf16.mxu1 %v2406_v1 }
 0x210   :  { %2063 = vmatpush3.bf16.msra.mxu1 %v2207_v54 }
 0x211   :  { %2064 = vmatprep.subr.bf16.mxu1 %v2406_v1 }
 0x214   :  { %2065 = vmatpush3.bf16.msra.mxu1 %v2208_v55 }
 0x215   :  { %2066 = vmatprep.subr.bf16.mxu1 %v2406_v1 }
 0x218   :  { %2067 = vmatpush3.bf16.msra.mxu1 %v770_v59 }
 0x219   :  { %2072 = vmatprep.subr.bf16.mxu1 %v2406_v1 }
 0x2d6   :  { %v708_v62 = vpop.f32.mrb[4].mxu1 }
 0x2d7   :  { %v709_v63 = vadd.f32 %v708_v62, %v594_v61  ;;  %v710_v2 = vpop.f32.mrb[5].mxu1 }
 0x2d8   :  { %v711_v3 = vpop.f32.mrb[6].mxu1 }
 0x2d9   :  { %v714_v4 = vmax.f32 %v709_v63, 0.0  ;;  %v712_v5 = vpop.f32.mrb[7].mxu1 }
 0x2db   :  { %v728_v6 = vpack.c.bf16 %v714_v4, %v714_v4 }
 0x2dd   :  { %2069 = vmatmul.mubr.msk.bf16.vlgmr.msra.gmra.mrb[8].mxu1 %vm764_vm7, %v728_v6 }
 0x2de   :  { %2076 = vmatprep.mubr.msk.bf16.mxu1 %vm2407_vm0, %v2406_v1  ;;  %2073 = vmatpush3.bf16.msra.mxu1 %v2210_v13 }
 0x2df   :  { %2074 = vmatprep.subr.bf16.mxu1 %v2579_v14 }
 0x3b0   :  { %v806_v16 = vpop.f32.mrb[8].mxu1 }
 0x3b1   :  { %v807_v17 = vadd.f32 %v806_v16, %v727_v15  ;;  %v2070_v18 = vpop.f32.mrb[9].mxu1  ;;  %v2211_v15 = vld [vmem:[#allocation2 + $0x420] ss:$12 sps:$4 sm:$0x7f]  }
 0x3b2   :  { %v809_v20 = vpop.f32.mrb[10].mxu1  ;;  %v1039_v16 = vsel %vm1037_vm14, %v2211_v15, 0 }
 0x3b3   :  { %v2529_v1 = vmax.f32 %v807_v17, 0.0  ;;  %v2071_v22 = vpop.f32.mrb[11].mxu1  ;;  %2075 = vmatpush3.bf16.msra.mxu1 %v1039_v16 }
 0x3b5   :  { %v822_v23 = vadd.f32 %v821_v19, %v2529_v1  ;;  %v951_v7 = vsel %vm852_vm11, %v2529_v1, -inf  ;;  %v936_v8 = vsel %vm836_vm9, %v2529_v1, -inf  ;;  %v981_v9 = vsel %vm884_vm10, %v2529_v1, -inf }
 0x3b6   :  { %v966_v10 = vsel %vm868_vm8, %v2529_v1, -inf  ;;  %v925_v11 = vsel %vm824_vm13, %v2529_v1, -inf  ;;  %v996_v12 = vsel %vm900_vm12, %v2529_v1, -inf }
 0x3b7   :  { %v823_v24 = vmul.f32 2.0, %v822_v23 }
 0x3b9   :  { %v869_v25 = vsel %vm868_vm8, %v823_v24, -inf  ;;  %v837_v26 = vsel %vm836_vm9, %v823_v24, -inf  ;;  %v885_v27 = vsel %vm884_vm10, %v823_v24, -inf  ;;  %v853_v28 = vsel %vm852_vm11, %v823_v24, -inf }
 0x3ba   :  { %870 = vmax.xlane.f32.xlu1 %v869_v25  ;;  %838 = vmax.xlane.f32.xlu0 %v837_v26  ;;  %v901_v29 = vsel %vm900_vm12, %v823_v24, -inf  ;;  %v825_v30 = vsel %vm824_vm13, %v823_v24, -inf  ;;  %vm919_vm8 = vcmask 121856   ;;  %vm921_vm9 = vcmask 162816  }
 0x3bb   :  { %vm923_vm10 = vcmask 203776   ;;  %vm1033_vm11 = vcmask 244736  }
 0x3be   :  { %886 = vmax.xlane.f32.xlu1 %v885_v27  ;;  %854 = vmax.xlane.f32.xlu0 %v853_v28 }
 0x3c2   :  { %902 = vmax.xlane.f32.xlu0 %v901_v29  ;;  %826 = vmax.xlane.f32.xlu1 %v825_v30 }
 0x447   :  { %v839_v31 = vpop.xlane.xlu0 %838  ;;  %v871_v32 = vpop.xlane.xlu1 %870 }
 0x448   :  { %v840_v33 = vsub.f32 %v823_v24, %v839_v31  ;;  %v872_v37 = vsub.f32 %v823_v24, %v871_v32 }
 0x44a   :  { %v841_v34 = vmul.f32 1.442695, %v840_v33  ;;  %v873_v42 = vmul.f32 1.442695, %v872_v37 }
 0x44b   :  { %v855_v35 = vpop.xlane.xlu0 %854  ;;  %v887_v38 = vpop.xlane.xlu1 %886 }
 0x44c   :  { %v856_v36 = vsub.f32 %v823_v24, %v855_v35  ;;  %2304 = vpow2.f32 %v841_v34  ;;  %v888_v43 = vsub.f32 %v823_v24, %v887_v38 }
 0x44e   :  { %v857_v39 = vmul.f32 1.442695, %v856_v36  ;;  %v889_v45 = vmul.f32 1.442695, %v888_v43 }
 0x44f   :  { %v903_v40 = vpop.xlane.xlu0 %902  ;;  %v827_v51 = vpop.xlane.xlu1 %826 }
 0x450   :  { %v904_v41 = vsub.f32 %v823_v24, %v903_v40  ;;  %2306 = vpow2.f32 %v857_v39  ;;  %v828_v52 = vsub.f32 %v823_v24, %v827_v51 }
 0x452   :  { %v905_v44 = vmul.f32 1.442695, %v904_v41  ;;  %v829_v53 = vmul.f32 1.442695, %v828_v52 }
 0x454   :  { %2308 = vpow2.f32 %v905_v44 }
 0x455   :  { %2310 = vpow2.f32 %v873_v42 }
 0x456   :  { %v2538_v46 = vpop.eup %2304  ;;  %2312 = vpow2.f32 %v889_v45 }
 0x457   :  { %844 = vrot.lane.b32.xlu0 %v2538_v46, %s2408_s1  ;;  %2314 = vpow2.f32 %v829_v53 }
 0x45a   :  { %v2542_v47 = vpop.eup %2306 }
 0x45b   :  { %860 = vrot.lane.b32.xlu1 %v2542_v47, %s2409_s18 }
 0x45e   :  { %v2546_v48 = vpop.eup %2308 }
 0x45f   :  { %v2548_v49 = vpop.eup %2310  ;;  %908 = vrot.lane.b32.xlu0 %v2546_v48, %s2410_s19 }
 0x460   :  { %876 = vrot.lane.b32.xlu1 %v2548_v49, %s2411_s20  ;;  %v2554_v50 = vpop.eup %2312 }
 0x461   :  { %v2315_v54 = vpop.eup %2314 }
 0x462   :  { %v831_v55 = vsel %vm824_vm13, %v2315_v54, 0.0 }
 0x464   :  { %892 = vrot.lane.b32.xlu1 %v2554_v50, %s2412_s21 }
 0x488   :  { %832 = vadd.xlane.f32.xlu1 %v831_v55 }
 0x4c9   :  { %v845_v56 = vpop.permute.xlu0 %844 }
 0x4ca   :  { %v847_v59 = vsel %vm824_vm13, %v845_v56, 0.0  ;;  %v2212_v56 = vld [vmem:[#allocation2 + $0x438] ss:$12 sps:$4 sm:$0xff]  }
 0x4cb   :  { %848 = vadd.xlane.f32.xlu0 %v847_v59  ;;  %v2214_v59 = vld [vmem:[#allocation2 + $0x43c] ss:$12 sps:$4 sm:$0xff]  }
 0x4cc   :  { %1175 = vmatprep.subr.bf16.mxu1 %v2214_v59 }
 0x4cd   :  { %v861_v61 = vpop.permute.xlu1 %860 }
 0x4ce   :  { %v863_v62 = vsel %vm824_vm13, %v861_v61, 0.0  ;;  %v2217_v61 = vld [vmem:[#allocation2 + $0x454] ss:$12 sps:$4 sm:$0xff]  }
 0x4cf   :  { %864 = vadd.xlane.f32.xlu0 %v863_v62  ;;  %v2215_v62 = vld [vmem:[#allocation2 + $0x450] ss:$12 sps:$4 sm:$0xff]  }
 0x4d1   :  { %v909_v3 = vpop.permute.xlu0 %908 }
 0x4d2   :  { %v877_v63 = vpop.permute.xlu1 %876  ;;  %v911_v5 = vsel %vm824_vm13, %v909_v3, 0.0  ;;  %v2223_v3 = vld [vmem:[#allocation2 + $0x484] ss:$12 sps:$4 sm:$0xff]  }
 0x4d3   :  { %v879_v2 = vsel %vm824_vm13, %v877_v63, 0.0  ;;  %v2220_v63 = vld [vmem:[#allocation2 + $0x46c] ss:$12 sps:$4 sm:$0xff]  }
 0x4d4   :  { %880 = vadd.xlane.f32.xlu0 %v879_v2  ;;  %v2218_v2 = vld [vmem:[#allocation2 + $0x468] ss:$12 sps:$4 sm:$0xff]  }
 0x4d6   :  { %v893_v4 = vpop.permute.xlu1 %892 }
 0x4d7   :  { %v895_v6 = vsel %vm824_vm13, %v893_v4, 0.0  ;;  %v2221_v4 = vld [vmem:[#allocation2 + $0x480] ss:$12 sps:$4 sm:$0xff]  }
 0x4d8   :  { %912 = vadd.xlane.f32.xlu0 %v911_v5  ;;  %896 = vadd.xlane.f32.xlu1 %v895_v6  ;;  %v2226_v5 = vld [vmem:[#allocation2 + $0x49c] ss:$12 sps:$4 sm:$0xff]   ;;  %v2224_v6 = vld [vmem:[#allocation2 + $0x498] ss:$12 sps:$4 sm:$0xff]  }
 0x4dc   :  { %952 = vmax.xlane.f32.xlu0 %v951_v7  ;;  %937 = vmax.xlane.f32.xlu1 %v936_v8  ;;  %v2227_v7 = vld [vmem:[#allocation2 + $0x4b4] ss:$12 sps:$4 sm:$0x1f]   ;;  %v2229_v8 = vld [vmem:[#allocation2 + $0x4b0] ss:$12 sps:$4 sm:$0x1f]  }
 0x4e0   :  { %982 = vmax.xlane.f32.xlu0 %v981_v9  ;;  %967 = vmax.xlane.f32.xlu1 %v966_v10  ;;  %v1170_v9 = vsel %vm768_vm6, %v2229_v8, 0  ;;  %v2258_v8 = vld [vmem:[#allocation2 + $0x570] ss:$12 sps:$4 sm:$0xff]  }
 0x4e4   :  { %926 = vmax.xlane.f32.xlu0 %v925_v11  ;;  %997 = vmax.xlane.f32.xlu1 %v996_v12 }
 0x515   :  { %v833_v18 = vpop.xlane.xlu1 %832 }
 0x516   :  { %2316 = vrcp.f32 %v833_v18 }
 0x520   :  { %v2317_v24 = vpop.eup %2316 }
 0x521   :  { %v835_v36 = vmul.f32 %v2317_v24, %v2315_v54 }
 0x558   :  { %v849_v17 = vpop.xlane.xlu0 %848 }
 0x559   :  { %2318 = vrcp.f32 %v849_v17 }
 0x55c   :  { %v865_v19 = vpop.xlane.xlu0 %864 }
 0x55d   :  { %2320 = vrcp.f32 %v865_v19 }
 0x561   :  { %v881_v20 = vpop.xlane.xlu0 %880 }
 0x562   :  { %2322 = vrcp.f32 %v881_v20 }
 0x563   :  { %v2319_v27 = vpop.eup %2318 }
 0x564   :  { %v851_v32 = vmul.f32 %v2319_v27, %v2538_v46  ;;  %v2234_v27 = vld [vmem:[#allocation2 + $0x4e0] ss:$12 sps:$4 sm:$0xff]  }
 0x565   :  { %v913_v22 = vpop.xlane.xlu0 %912  ;;  %v897_v23 = vpop.xlane.xlu1 %896 }
 0x566   :  { %2324 = vrcp.f32 %v913_v22  ;;  %v916_v41 = vsel %vm824_vm13, %v835_v36, %v851_v32  ;;  %v2248_v32 = vld [vmem:[#allocation2 + $0x52c] ss:$12 sps:$4 sm:$0xff]  }
 0x567   :  { %2326 = vrcp.f32 %v897_v23  ;;  %v2321_v29 = vpop.eup %2320 }
 0x568   :  { %v867_v34 = vmul.f32 %v2321_v29, %v2542_v47  ;;  %v2238_v29 = vld [vmem:[#allocation2 + $0x4f8] ss:$12 sps:$4 sm:$0xff]  }
 0x569   :  { %v2582_v25 = vpop.xlane.xlu0 %952  ;;  %v938_v26 = vpop.xlane.xlu1 %937 }
 0x56a   :  { %v939_v28 = vsub.f32 %v2529_v1, %v938_v26  ;;  %v918_v44 = vsel %vm917_vm15, %v916_v41, %v867_v34  ;;  %v954_v11 = vsub.f32 %v2529_v1, %v2582_v25  ;;  %v2230_v25 = vld [vmem:[#allocation2 + $0x4c8] ss:$12 sps:$4 sm:$0xff]   ;;  %v2236_v26 = vld [vmem:[#allocation2 + $0x4e4] ss:$12 sps:$4 sm:$0xff]  }
 0x56b   :  { %v1020_v34 = vld [vmem:[#allocation4 + $0x4] ss:$0 sm:$0xff]  ;;  %v2233_v41 = vld [vmem:[#allocation2 + $0x4d0] ss:$12 sps:$4 sm:$0xff]  }
 0x56c   :  { %v2323_v30 = vpop.eup %2322  ;;  %v940_v31 = vmul.f32 1.442695, %v939_v28  ;;  %v955_v15 = vmul.f32 1.442695, %v954_v11  ;;  %v2240_v28 = vld [vmem:[#allocation2 + $0x4fc] ss:$12 sps:$4 sm:$0xff]  }
 0x56d   :  { %v983_v33 = vpop.xlane.xlu0 %982  ;;  %v883_v37 = vmul.f32 %v2323_v30, %v2548_v49  ;;  %v968_v10 = vpop.xlane.xlu1 %967  ;;  %v2244_v30 = vld [vmem:[#allocation2 + $0x514] ss:$12 sps:$4 sm:$0xff]  }
 0x56e   :  { %v984_v35 = vsub.f32 %v2529_v1, %v983_v33  ;;  %2328 = vpow2.f32 %v940_v31  ;;  %v969_v16 = vsub.f32 %v2529_v1, %v968_v10  ;;  %v2242_v31 = vld [vmem:[#allocation2 + $0x510] ss:$12 sps:$4 sm:$0xff]   ;;  %v2246_v33 = vld [vmem:[#allocation2 + $0x528] ss:$12 sps:$4 sm:$0xff]   ;;  %v2264_v10 = vld [vmem:[#allocation2 + $0x58c] ss:$12 sps:$4 sm:$0xff]  }
 0x56f   :  { %v920_v47 = vsel %vm919_vm8, %v918_v44, %v883_v37  ;;  %v2241_v44 = vld [vmem:[#allocation2 + $0x500] ss:$12 sps:$4 sm:$0xff]   ;;  %v2262_v11 = vld [vmem:[#allocation2 + $0x588] ss:$12 sps:$4 sm:$0xff]  }
 0x570   :  { %v2325_v38 = vpop.eup %2324  ;;  %v985_v39 = vmul.f32 1.442695, %v984_v35  ;;  %v970_v18 = vmul.f32 1.442695, %v969_v16  ;;  %v2269_v16 = vld [vmem:[#allocation2 + $0x5a8] ss:$12 sps:$4 sm:$0xff]  }
 0x571   :  { %v2327_v40 = vpop.eup %2326  ;;  %v915_v42 = vmul.f32 %v2325_v38, %v2546_v48  ;;  %v927_v43 = vpop.xlane.xlu0 %926 }
 0x572   :  { %v899_v45 = vmul.f32 %v2327_v40, %v2554_v50  ;;  %2330 = vpow2.f32 %v985_v39  ;;  %v928_v46 = vsub.f32 %v2529_v1, %v927_v43  ;;  %v998_v17 = vpop.xlane.xlu1 %997  ;;  %v2237_v43 = vld [vmem:[#allocation2 + $0x4e8] ss:$12 sps:$4 sm:$0xff]  }
 0x573   :  { %v999_v19 = vsub.f32 %v2529_v1, %v998_v17  ;;  %v2232_v1 = vld [vmem:[#allocation2 + $0x4cc] ss:$12 sps:$4 sm:$0xff]   ;;  %v2272_v17 = vld [vmem:[#allocation2 + $0x5bc] ss:$12 sps:$4 sm:$0xff]  }
 0x574   :  { %v929_v49 = vmul.f32 1.442695, %v928_v46  ;;  %v922_v51 = vsel %vm921_vm9, %v920_v47, %v899_v45  ;;  %1480 = vmatprep.subr.bf16.mxu0 %v2232_v1  ;;  %v2245_v45 = vld [vmem:[#allocation2 + $0x518] ss:$12 sps:$4 sm:$0xff]  }
 0x575   :  { %v924_v52 = vsel %vm923_vm10, %v922_v51, %v915_v42  ;;  %v1000_v20 = vmul.f32 1.442695, %v999_v19  ;;  %1481 = vmatpush1.bf16.msra.mxu0 %v2230_v25  ;;  %v2273_v19 = vld [vmem:[#allocation2 + $0x5c0] ss:$12 sps:$4 sm:$0xff]  }
 0x576   :  { %2332 = vpow2.f32 %v929_v49  ;;  %v1021_v48 = vpack.c.bf16 %v924_v52, %v924_v52  ;;  %1482 = vmatprep.subr.bf16.mxu0 %v2236_v26  ;;  %v2276_v26 = vld [vmem:[#allocation2 + $0x5d8] ss:$0 sps:$4 sm:$0x33]  }
 0x577   :  { %2334 = vpow2.f32 %v955_v15  ;;  %v2266_v15 = vld [vmem:[#allocation2 + $0x5a0] ss:$12 sps:$4 sm:$0xff]  }
 0x578   :  { %2077 = vmatmul.mubr.msk.bf16.vlgmr.msra.gmra.mrb[12].mxu1 %vm1033_vm11, %v1021_v48  ;;  %v2597_v53 = vpop.eup %2328  ;;  %2336 = vpow2.f32 %v970_v18  ;;  %v2270_v18 = vld [vmem:[#allocation2 + $0x5b8] ss:$12 sps:$4 sm:$0xff]  }
 0x579   :  { %1207 = vmatprep.mubr.bf16.mxu1 %v2405_v0  ;;  %943 = vrot.lane.b32.xlu0 %v2597_v53, %s2408_s1  ;;  %2338 = vpow2.f32 %v1000_v20  ;;  %v1262_v20 = vld [vmem:[#allocation2 + $0x5d0] sm:$0x33] }
 0x57a   :  { %1176 = vmatpush1.bf16.msra.mxu1 %v2212_v56  ;;  %1483 = vmatpush1.bf16.msra.mxu0 %v2234_v27  ;;  %v1976_v25 = vcombine.high %v1262_v20, %v1262_v20  ;;  %v1975_v1 = vcombine.low %v1262_v20, %v1262_v20  ;;  %v2296_v20 = vld [vmem:[#allocation2 + $0x678] ss:$12 sps:$4 sm:$0xff]  }
 0x57b   :  { %1177 = vmatprep.subr.bf16.mxu1 %v2217_v61  ;;  %1484 = vmatprep.subr.bf16.mxu0 %v2240_v28  ;;  %v1478_v28 = vsel %vm670_vm4, %v2276_v26, 0  ;;  %v2298_v26 = vld [vmem:[#allocation2 + $0x750] ss:$12 sps:$4 sm:$0xff]  }
 0x57c   :  { %v2602_v50 = vpop.eup %2330  ;;  %v1472_v27 = vsel %vm670_vm4, %v1975_v1, 0 }
 0x57d   :  { %988 = vrot.lane.b32.xlu0 %v2602_v50, %s2412_s21 }
 0x57e   :  { %1178 = vmatpush1.bf16.msra.mxu1 %v2215_v62  ;;  %1485 = vmatpush1.bf16.msra.mxu0 %v2238_v29  ;;  %v2249_v62 = vld [vmem:[#allocation2 + $0x530] ss:$12 sps:$4 sm:$0xff]  }
 0x57f   :  { %1179 = vmatprep.subr.bf16.mxu1 %v2220_v63  ;;  %1486 = vmatprep.subr.bf16.mxu0 %v2244_v30  ;;  %v2252_v63 = vld [vmem:[#allocation2 + $0x544] ss:$12 sps:$4 sm:$0xff]  }
 0x580   :  { %v2606_v54 = vpop.eup %2332 }
 0x581   :  { %v931_v55 = vsel %vm824_vm13, %v2606_v54, 0.0  ;;  %v2618_v22 = vpop.eup %2334 }
 0x582   :  { %932 = vadd.xlane.f32.xlu1 %v931_v55  ;;  %1180 = vmatpush1.bf16.msra.mxu1 %v2218_v2  ;;  %v2622_v23 = vpop.eup %2336  ;;  %v2250_v2 = vld [vmem:[#allocation2 + $0x540] ss:$12 sps:$4 sm:$0xff]  }
 0x583   :  { %1181 = vmatprep.subr.bf16.mxu1 %v2223_v3  ;;  %v2626_v24 = vpop.eup %2338  ;;  %1487 = vmatpush1.bf16.msra.mxu0 %v2242_v31  ;;  %v2253_v3 = vld [vmem:[#allocation2 + $0x548] ss:$12 sps:$4 sm:$0xff]  }
 0x584   :  { %1488 = vmatprep.subr.bf16.mxu0 %v2248_v32  ;;  %v2277_v32 = vld [vmem:[#allocation2 + $0x6a8] ss:$12 sps:$4 sm:$0xff]  }
 0x586   :  { %1182 = vmatpush1.bf16.msra.mxu1 %v2221_v4  ;;  %v2256_v4 = vld [vmem:[#allocation2 + $0x55c] ss:$12 sps:$4 sm:$0xff]  }
 0x587   :  { %1183 = vmatprep.subr.bf16.mxu1 %v2226_v5  ;;  %1489 = vmatpush1.bf16.msra.mxu0 %v2246_v33  ;;  %v2254_v5 = vld [vmem:[#allocation2 + $0x558] ss:$12 sps:$4 sm:$0xff]  }
 0x588   :  { %1490 = vmatprep.subr.bf16.mxu0 %v2252_v63  ;;  %v2279_v63 = vld [vmem:[#allocation2 + $0x768] ss:$12 sps:$4 sm:$0xff]  }
 0x58a   :  { %1184 = vmatpush1.bf16.msra.mxu1 %v2224_v6  ;;  %v2257_v6 = vld [vmem:[#allocation2 + $0x560] ss:$12 sps:$4 sm:$0xff]  }
 0x58b   :  { %1940 = vmatprep.subr.msk.bf16.mxu1 %vm768_vm6, %v2227_v7  ;;  %1491 = vmatpush1.bf16.msra.mxu0 %v2250_v2  ;;  %v2260_v7 = vld [vmem:[#allocation2 + $0x574] ss:$12 sps:$4 sm:$0xff]  }
 0x58c   :  { %1492 = vmatprep.subr.bf16.mxu0 %v2256_v4  ;;  %v2281_v4 = vld [vmem:[#allocation2 + $0x600] ss:$12 sps:$4 sm:$0xff]  }
 0x58e   :  { %1186 = vmatpush1.bf16.msra.mxu1 %v1170_v9  ;;  %v2261_v9 = vld [vmem:[#allocation2 + $0x578] ss:$12 sps:$4 sm:$0xff]  }
 0x58f   :  { %1521 = vmatprep.subr.bf16.mxu1 %v2405_v0  ;;  %1493 = vmatpush1.bf16.msra.mxu0 %v2254_v5  ;;  %v2282_v5 = vld [vmem:[#allocation2 + $0x780] ss:$12 sps:$4 sm:$0xff]  }
 0x590   :  { %1494 = vmatprep.subr.bf16.mxu0 %v2260_v7  ;;  %v2284_v7 = vld [vmem:[#allocation2 + $0x618] ss:$12 sps:$4 sm:$0xff]  }
 0x593   :  { %1495 = vmatpush1.bf16.msra.mxu0 %v2258_v8  ;;  %v2285_v8 = vld [vmem:[#allocation2 + $0x798] ss:$12 sps:$4 sm:$0xff]  }
 0x594   :  { %1496 = vmatprep.subr.bf16.mxu0 %v2264_v10  ;;  %v2287_v10 = vld [vmem:[#allocation2 + $0x630] ss:$12 sps:$4 sm:$0xff]  }
 0x597   :  { %1497 = vmatpush1.bf16.msra.mxu0 %v2262_v11  ;;  %v2288_v11 = vld [vmem:[#allocation2 + $0x7b0] ss:$12 sps:$4 sm:$0xff]  }
 0x5eb   :  { %v944_v12 = vpop.permute.xlu0 %943 }
 0x5ec   :  { %v946_v13 = vsel %vm824_vm13, %v944_v12, 0.0  ;;  %v2265_v12 = vld [vmem:[#allocation2 + $0x590] ss:$12 sps:$4 sm:$0xff]  }
 0x5ed   :  { %947 = vadd.xlane.f32.xlu1 %v946_v13  ;;  %v2268_v13 = vld [vmem:[#allocation2 + $0x5a4] ss:$12 sps:$4 sm:$0xff]  }
 0x5ee   :  { %1498 = vmatprep.subr.bf16.mxu0 %v2268_v13  ;;  %v2290_v13 = vld [vmem:[#allocation2 + $0x648] ss:$12 sps:$4 sm:$0xff]  }
 0x5ef   :  { %v989_v52 = vpop.permute.xlu0 %988  ;;  %1499 = vmatpush1.bf16.msra.mxu0 %v2266_v15  ;;  %v2291_v15 = vld [vmem:[#allocation2 + $0x7c8] ss:$12 sps:$4 sm:$0xff]  }
 0x5f0   :  { %v991_v55 = vsel %vm824_vm13, %v989_v52, 0.0  ;;  %1500 = vmatprep.subr.bf16.mxu0 %v2272_v17  ;;  %v2293_v17 = vld [vmem:[#allocation2 + $0x660] ss:$12 sps:$4 sm:$0xff]  }
 0x5f3   :  { %1501 = vmatpush1.bf16.msra.mxu0 %v2270_v18  ;;  %v2294_v18 = vld [vmem:[#allocation2 + $0x7e0] ss:$12 sps:$4 sm:$0xff]  }
 0x5f4   :  { %1978 = vmatprep.subr.msk.bf16.mxu0 %vm670_vm4, %v1976_v25  ;;  %v2297_v25 = vld [vmem:[#allocation2 + $0x7f8] ss:$0 sps:$4 sm:$0xff]  }
 0x5f5   :  { %v1752_v1 = vsel %vm97_vm1, %v2297_v25, 0 }
 0x5f7   :  { %1503 = vmatpush1.bf16.msra.mxu0 %v1472_v27  ;;  %v2299_v27 = vld [vmem:[#allocation2 + $0x690] ss:$12 sps:$4 sm:$0xff]  }
 0x5f8   :  { %2018 = vmatprep.subr.bf16.mxu0 %v2277_v32 }
 0x5fe   :  { %958 = vrot.lane.b32.xlu1 %v2618_v22, %s2409_s18 }
 0x602   :  { %973 = vrot.lane.b32.xlu1 %v2622_v23, %s2411_s20 }
 0x606   :  { %1003 = vrot.lane.b32.xlu1 %v2626_v24, %s2410_s19 }
 0x60f   :  { %v2635_v46 = vpop.xlane.xlu1 %932 }
 0x64b   :  { %v1075_v35 = vpop.f32.mrb[12].mxu1 }
 0x64c   :  { %v1076_v36 = vadd.f32 %v1075_v35, %v1020_v34  ;;  %v2078_v37 = vpop.f32.mrb[13].mxu1 }
 0x64d   :  { %v1078_v38 = vpop.f32.mrb[14].mxu1 }
 0x64e   :  { %v1081_v39 = vmax.f32 %v1076_v36, 0.0  ;;  %v2079_v40 = vpop.f32.mrb[15].mxu1 }
 0x650   :  { %v1096_v42 = vpack.c.bf16 %v1081_v39, %v1081_v39 }
 0x652   :  { %1941 = vmatmul.mubr.msk.bf16.vlgmr.msra.gmra.mrb[16].mxu1 %vm764_vm7, %v1096_v42 }
 0x653   :  { %1522 = vmatpush1.bf16.msra.mxu1 %v2233_v41 }
 0x654   :  { %1523 = vmatprep.subr.bf16.mxu1 %v2405_v0 }
 0x657   :  { %1524 = vmatpush1.bf16.msra.mxu1 %v2237_v43 }
 0x658   :  { %1525 = vmatprep.subr.bf16.mxu1 %v2405_v0 }
 0x65b   :  { %1526 = vmatpush1.bf16.msra.mxu1 %v2241_v44  ;;  %v1095_v44 = vld [vmem:[#allocation4 + $0x5] ss:$8 sm:$0x3] }
 0x65c   :  { %1527 = vmatprep.subr.bf16.mxu1 %v2405_v0 }
 0x65f   :  { %1528 = vmatpush1.bf16.msra.mxu1 %v2245_v45 }
 0x660   :  { %1529 = vmatprep.subr.bf16.mxu1 %v2405_v0 }
 0x663   :  { %1530 = vmatpush1.bf16.msra.mxu1 %v2249_v62 }
 0x664   :  { %1531 = vmatprep.subr.bf16.mxu1 %v2405_v0 }
 0x667   :  { %1532 = vmatpush1.bf16.msra.mxu1 %v2253_v3  ;;  %v2280_v3 = vld [vmem:[#allocation2 + $0x6c0] ss:$12 sps:$4 sm:$0xff]  }
 0x668   :  { %1533 = vmatprep.subr.bf16.mxu1 %v2405_v0 }
 0x66b   :  { %1534 = vmatpush1.bf16.msra.mxu1 %v2257_v6  ;;  %v2283_v6 = vld [vmem:[#allocation2 + $0x6d8] ss:$12 sps:$4 sm:$0xff]  }
 0x66c   :  { %1535 = vmatprep.subr.bf16.mxu1 %v2405_v0 }
 0x66f   :  { %1536 = vmatpush1.bf16.msra.mxu1 %v2261_v9  ;;  %v2286_v9 = vld [vmem:[#allocation2 + $0x6f0] ss:$12 sps:$4 sm:$0xff]  }
 0x670   :  { %1537 = vmatprep.subr.bf16.mxu1 %v2405_v0 }
 0x673   :  { %1538 = vmatpush1.bf16.msra.mxu1 %v2265_v12  ;;  %v2289_v12 = vld [vmem:[#allocation2 + $0x708] ss:$12 sps:$4 sm:$0xff]  }
 0x674   :  { %1539 = vmatprep.subr.bf16.mxu1 %v2405_v0 }
 0x677   :  { %1540 = vmatpush1.bf16.msra.mxu1 %v2269_v16  ;;  %v2292_v16 = vld [vmem:[#allocation2 + $0x720] ss:$12 sps:$4 sm:$0xff]  }
 0x678   :  { %1541 = vmatprep.subr.bf16.mxu1 %v2405_v0 }
 0x67a   :  { %v2637_v47 = vpop.xlane.xlu1 %947 }
 0x67b   :  { %1542 = vmatpush1.bf16.msra.mxu1 %v2273_v19  ;;  %2340 = vrcp.f32 %v2637_v47  ;;  %v2295_v19 = vld [vmem:[#allocation2 + $0x738] ss:$12 sps:$4 sm:$0xff]  }
 0x67c   :  { %1543 = vmatprep.subr.bf16.mxu1 %v2405_v0 }
 0x67e   :  { %v959_v49 = vpop.permute.xlu1 %958 }
 0x67f   :  { %v961_v51 = vsel %vm824_vm13, %v959_v49, 0.0  ;;  %1544 = vmatpush1.bf16.msra.mxu1 %v1478_v28  ;;  %v1265_v28 = vld [vmem:[#allocation4 + $0x6] ss:$8 sm:$0x7] }
 0x680   :  { %962 = vadd.xlane.f32.xlu0 %v961_v51  ;;  %2080 = vmatprep.subr.bf16.mxu1 %v2579_v14 }
 0x682   :  { %v974_v48 = vpop.permute.xlu1 %973 }
 0x683   :  { %v976_v56 = vsel %vm824_vm13, %v974_v48, 0.0 }
 0x684   :  { %992 = vadd.xlane.f32.xlu0 %v991_v55  ;;  %977 = vadd.xlane.f32.xlu1 %v976_v56 }
 0x685   :  { %v2341_v33 = vpop.eup %2340 }
 0x686   :  { %v1004_v59 = vpop.permute.xlu1 %1003  ;;  %v950_v36 = vmul.f32 %v2341_v33, %v2597_v53 }
 0x687   :  { %v1006_v61 = vsel %vm824_vm13, %v1004_v59, 0.0 }
 0x688   :  { %1007 = vadd.xlane.f32.xlu0 %v1006_v61 }
 0x70d   :  { %v963_v29 = vpop.xlane.xlu0 %962 }
 0x70e   :  { %2342 = vrcp.f32 %v963_v29  ;;  %v1272_v29 = vrot.slane %v1265_v28, %v2494_v58 }
 0x70f   :  { %2344 = vrcp.f32 %v2635_v46 }
 0x711   :  { %v993_v30 = vpop.xlane.xlu0 %992  ;;  %v978_v0 = vpop.xlane.xlu1 %977 }
 0x712   :  { %2346 = vrcp.f32 %v993_v30  ;;  %v1280_v30 = vrot.slane %v1265_v28, %v64_v21 }
 0x713   :  { %2348 = vrcp.f32 %v978_v0  ;;  %v1276_v0 = vrot.slane %v1265_v28, %v2497_v60 }
 0x715   :  { %v1008_v31 = vpop.xlane.xlu0 %1007 }
 0x716   :  { %2350 = vrcp.f32 %v1008_v31 }
 0x718   :  { %v2343_v34 = vpop.eup %2342 }
 0x719   :  { %v2345_v35 = vpop.eup %2344  ;;  %v965_v37 = vmul.f32 %v2343_v34, %v2618_v22  ;;  %v1101_v22 = vrot.slane %v1095_v44, %v2494_v58 }
 0x71a   :  { %v935_v39 = vmul.f32 %v2345_v35, %v2606_v54  ;;  %v1105_v54 = vrot.slane %v1095_v44, %v2497_v60 }
 0x71c   :  { %v2347_v38 = vpop.eup %2346  ;;  %v1011_v43 = vsel %vm824_vm13, %v935_v39, %v950_v36 }
 0x71d   :  { %v2349_v40 = vpop.eup %2348  ;;  %v995_v42 = vmul.f32 %v2347_v38, %v2602_v50  ;;  %v1012_v45 = vsel %vm917_vm15, %v1011_v43, %v965_v37 }
 0x71e   :  { %v980_v41 = vmul.f32 %v2349_v40, %v2622_v23 }
 0x720   :  { %v2351_v46 = vpop.eup %2350  ;;  %v1013_v47 = vsel %vm919_vm8, %v1012_v45, %v980_v41 }
 0x721   :  { %v1010_v53 = vmul.f32 %v2351_v46, %v2626_v24  ;;  %v1014_v49 = vsel %vm921_vm9, %v1013_v47, %v995_v42  ;;  %v2278_v24 = vld [vmem:[#allocation2 + $0x5e8] ss:$12 sps:$4 sm:$0xff]  }
 0x722   :  { %v1609_v47 = vld [vmem:[#allocation4 + $0x7] ss:$0 sm:$0xff] }
 0x723   :  { %v1015_v23 = vsel %vm923_vm10, %v1014_v49, %v1010_v53 }
 0x724   :  { %1837 = vrot.lane.b32.xlu0 %v1015_v23, %s2413_s24 }
 0x725   :  { %v1209_v50 = vpop.f32.mrb[16].mxu1 }
 0x726   :  { %v1210_v51 = vadd.f32 %v1209_v50, %v1101_v22  ;;  %v1211_v52 = vpop.f32.mrb[17].mxu1 }
 0x727   :  { %v1212_v48 = vadd.f32 %v1211_v52, %v1105_v54  ;;  %v1213_v55 = vpop.f32.mrb[18].mxu1 }
 0x728   :  { %v1216_v56 = vmax.f32 %v1210_v51, 0.0  ;;  %v1214_v59 = vpop.f32.mrb[19].mxu1 }
 0x729   :  { %v1217_v61 = vmax.f32 %v1212_v48, 0.0 }
 0x72a   :  { %v1266_v2 = vpack.c.bf16 %v1216_v56, %v1216_v56 }
 0x72b   :  { %v1267_v62 = vpack.c.bf16 %v1217_v61, %v1217_v61 }
 0x72d   :  { %1979 = vmatprep.mubr.msk.bf16.mxu0 %vm666_vm5, %v1267_v62  ;;  %1980 = vmatprep.mubr.msk.bf16.mxu1 %vm666_vm5, %v1267_v62 }
 0x72e   :  { %1513 = vmatmul.mubr.bf16.vlgmr.msra.gmra.mrb[8].mxu0 %v1266_v2  ;;  %1554 = vmatmul.mubr.bf16.vlgmr.msra.gmra.mrb[20].mxu1 %v1266_v2 }
 0x72f   :  { %2019 = vmatpush3.bf16.msra.mxu0 %v2278_v24  ;;  %2081 = vmatpush3.bf16.msra.mxu1 %v2279_v63 }
 0x730   :  { %2020 = vmatprep.subr.bf16.mxu0 %v2280_v3  ;;  %2082 = vmatprep.subr.bf16.mxu1 %v2579_v14 }
 0x731   :  { %2094 = vmatprep.mubr.msk.bf16.mxu1 %vm2407_vm0, %v2579_v14  ;;  %vm1840_vm0 = vcmask 769536  }
 0x733   :  { %2021 = vmatpush3.bf16.msra.mxu0 %v2281_v4  ;;  %2083 = vmatpush3.bf16.msra.mxu1 %v2282_v5 }
 0x734   :  { %2022 = vmatprep.subr.bf16.mxu0 %v2283_v6  ;;  %2084 = vmatprep.subr.bf16.mxu1 %v2579_v14 }
 0x737   :  { %2023 = vmatpush3.bf16.msra.mxu0 %v2284_v7  ;;  %2085 = vmatpush3.bf16.msra.mxu1 %v2285_v8 }
 0x738   :  { %2024 = vmatprep.subr.bf16.mxu0 %v2286_v9  ;;  %2086 = vmatprep.subr.bf16.mxu1 %v2579_v14 }
 0x73b   :  { %2025 = vmatpush3.bf16.msra.mxu0 %v2287_v10  ;;  %2087 = vmatpush3.bf16.msra.mxu1 %v2288_v11 }
 0x73c   :  { %2026 = vmatprep.subr.bf16.mxu0 %v2289_v12  ;;  %2088 = vmatprep.subr.bf16.mxu1 %v2579_v14 }
 0x73f   :  { %2027 = vmatpush3.bf16.msra.mxu0 %v2290_v13  ;;  %2089 = vmatpush3.bf16.msra.mxu1 %v2291_v15 }
 0x740   :  { %2028 = vmatprep.subr.bf16.mxu0 %v2292_v16  ;;  %2090 = vmatprep.subr.bf16.mxu1 %v2579_v14 }
 0x743   :  { %2029 = vmatpush3.bf16.msra.mxu0 %v2293_v17  ;;  %2091 = vmatpush3.bf16.msra.mxu1 %v2294_v18 }
 0x744   :  { %2030 = vmatprep.subr.bf16.mxu0 %v2295_v19  ;;  %2092 = vmatprep.subr.bf16.mxu1 %v2579_v14 }
 0x747   :  { %2031 = vmatpush3.bf16.msra.mxu0 %v2296_v20  ;;  %2093 = vmatpush3.bf16.msra.mxu1 %v1752_v1 }
 0x748   :  { %2032 = vmatprep.subr.bf16.mxu0 %v2298_v26 }
 0x74b   :  { %2033 = vmatpush3.bf16.msra.mxu0 %v2299_v27 }
 0x796   :  { %v1838_v52 = vpop.permute.xlu0 %1837 }
 0x801   :  { %v1514_v31 = vpop.f32.mrb[8].mxu0  ;;  %v1555_v32 = vpop.f32.mrb[20].mxu1 }
 0x802   :  { %v1515_v14 = vadd.f32 %v1514_v31, %v1272_v29  ;;  %v1556_v33 = vadd.f32 %v1555_v32, %v1280_v30  ;;  %v1516_v34 = vpop.f32.mrb[9].mxu0  ;;  %v1557_v35 = vpop.f32.mrb[21].mxu1 }
 0x803   :  { %v1517_v36 = vadd.f32 %v1516_v34, %v1276_v0  ;;  %v1518_v37 = vpop.f32.mrb[10].mxu0  ;;  %v1558_v38 = vpop.f32.mrb[22].mxu1 }
 0x804   :  { %v1561_v39 = vmax.f32 %v1515_v14, 0.0  ;;  %v1563_v40 = vmax.f32 %v1556_v33, 0.0  ;;  %v1519_v41 = vpop.f32.mrb[11].mxu0  ;;  %v1559_v42 = vpop.f32.mrb[23].mxu1 }
 0x805   :  { %v1562_v43 = vmax.f32 %v1517_v36, 0.0 }
 0x806   :  { %v1612_v58 = vpack.c.bf16 %v1563_v40, %v1563_v40  ;;  %v1610_v57 = vpack.c.bf16 %v1561_v39, %v1561_v39 }
 0x807   :  { %v1611_v44 = vpack.c.bf16 %v1562_v43, %v1562_v43 }
 0x808   :  { %2095 = vmatmul.mubr.msk.bf16.vlgmr.msra.gmra.mrb[24].mxu1 %vm477_vm3, %v1612_v58 }
 0x809   :  { %1786 = vmatprep.mubr.bf16.mxu0 %v1611_v44 }
 0x80a   :  { %1787 = vmatmul.mubr.bf16.vlgmr.msra.gmra.mrb[12].mxu0 %v1610_v57 }
 0x8db   :  { %v1828_v60 = vpop.f32.mrb[24].mxu1 }
 0x8dc   :  { %v2096_v21 = vpop.f32.mrb[25].mxu1 }
 0x8dd   :  { %v2034_v45 = vpop.f32.mrb[12].mxu0  ;;  %v1831_v46 = vpop.f32.mrb[26].mxu1 }
 0x8de   :  { %v2035_v53 = vpop.f32.mrb[13].mxu0  ;;  %v2097_v22 = vpop.f32.mrb[27].mxu1 }
 0x8df   :  { %v2036_v49 = vadd.f32 %v2035_v53, %v2034_v45  ;;  %v2037_v54 = vpop.f32.mrb[14].mxu0 }
 0x8e0   :  { %v2038_v23 = vpop.f32.mrb[15].mxu0 }
 0x8e1   :  { %v1789_v50 = vadd.f32 %v2036_v49, %v1609_v47 }
 0x8e3   :  { %v1829_v51 = vadd.f32 %v1828_v60, %v1789_v50 }
 0x8e5   :  { %1835 = vst.msk [vmem:[%s2696_s4] sm:$0xff] %vm93_vm2, %v1829_v51 }
 0x8e6   :  { %1841 = vst.msk [vmem:[%s2696_s4] sm:$0xff] %vm1840_vm0, %v1838_v52 }
 0x8e7   :  { %1846 = vsyncpa [#allocation3], 1 }
 0x8e8   :  { %1847 = vsyncpa [#allocation5], 1 }

</bundles_post_ra>
